<compile_context>
chip_gen: v5e
topology: v5e:2x2
jax: 0.10.0
libtpu: 0.0.40
codegen_flags: <defaults>
</compile_context>

<pallas_src>
import functools
import math

import jax
import jax.numpy as jnp
from jax import lax
from jax.experimental import pallas as pl
from jax.experimental.pallas import tpu as pltpu


# ----------------------------------------------------------------------------
# Fused two-layer LSTM kernel (whole episode sequence in one VMEM-resident call).
# ----------------------------------------------------------------------------
def mann_fused_kernel(x_ref, wih1_ref, whh1_ref, b1_ref,
                      wih2_ref, whh2_ref, b2_ref, out_ref, *, T, B):
    """
    x_ref:    [T*B, D1]   time-major flattened inputs (row = t*B + b)
    wih1_ref: [D1, 4*H1]  layer-1 input->gates (gate cols: i, f, o, g)
    whh1_ref: [H1, 4*H1]  layer-1 hidden->gates
    b1_ref:   [1, 4*H1]   layer-1 combined bias (b_ih + b_hh)
    wih2_ref: [H1, 4*H2]  layer-2 input->gates
    whh2_ref: [H2, 4*H2]  layer-2 hidden->gates
    b2_ref:   [1, 4*H2]   layer-2 combined bias
    out_ref:  [B, T*H2]   layer-2 hidden state per timestep, lane-packed by t
    """
    H1 = whh1_ref.shape[0]
    H2 = whh2_ref.shape[0]

    # Hoisted layer-1 input projection: one MXU matmul with M = T*B (not 2) and a
    # dense 128-lane output; bias add also hoisted out of the serial loop.
    gx1 = (jnp.dot(x_ref[...], wih1_ref[...], preferred_element_type=jnp.float32)
           + b1_ref[...])                                   # [T*B, 4*H1]

    whh1 = whh1_ref[...]
    wih2 = wih2_ref[...]
    whh2 = whh2_ref[...]
    b2 = b2_ref[...]

    # Recurrent carries live in vregs (no VMEM scratch round trips).
    h1 = jnp.zeros((B, H1), jnp.float32)
    c1 = jnp.zeros((B, H1), jnp.float32)
    h2 = jnp.zeros((B, H2), jnp.float32)
    c2 = jnp.zeros((B, H2), jnp.float32)

    # T is a small static constant -> full unroll (equivalent to fori_loop(unroll=True));
    # all slice offsets below are compile-time constants.
    for t in range(T):
        # ---- layer 1: only the recurrent matmul remains in the loop ----
        g1 = gx1[t * B:(t + 1) * B, :] + jnp.dot(
            h1, whh1, preferred_element_type=jnp.float32)    # [B, 4*H1]
        s1 = jax.nn.sigmoid(g1[:, :3 * H1])                  # (i, f, o) in one EUP pass
        u1 = jnp.tanh(g1[:, 3 * H1:])                        # g
        c1 = s1[:, H1:2 * H1] * c1 + s1[:, :H1] * u1
        h1 = s1[:, 2 * H1:] * jnp.tanh(c1)

        # ---- layer 2: fused, consumes h1(t) straight from vregs ----
        g2 = (jnp.dot(h1, wih2, preferred_element_type=jnp.float32)
              + jnp.dot(h2, whh2, preferred_element_type=jnp.float32)
              + b2)                                          # [B, 4*H2]
        s2 = jax.nn.sigmoid(g2[:, :3 * H2])
        u2 = jnp.tanh(g2[:, 3 * H2:])
        c2 = s2[:, H2:2 * H2] * c2 + s2[:, :H2] * u2
        h2 = s2[:, 2 * H2:] * jnp.tanh(c2)

        # Static lane-slice store into the single [B, T*H2] output slab
        # (off the recurrence critical path; one HBM writeback at kernel end).
        out_ref[:, t * H2:(t + 1) * H2] = h2.astype(out_ref.dtype)


def mann_fused_pallas(x2d, T, B, params):
    """x2d: [T*B, D1] time-major inputs -> [B, T*H2] lane-packed layer-2 outputs."""
    H2 = params["w_hh2"].shape[0]
    kernel = functools.partial(mann_fused_kernel, T=T, B=B)
    return pl.pallas_call(
        kernel,
        out_shape=jax.ShapeDtypeStruct((B, T * H2), jnp.float32),
        in_specs=[pl.BlockSpec(memory_space=pltpu.MemorySpace.VMEM)] * 7,
        out_specs=pl.BlockSpec(memory_space=pltpu.MemorySpace.VMEM),
    )(x2d, params["w_ih1"], params["w_hh1"], params["b1"],
      params["w_ih2"], params["w_hh2"], params["b2"])


# ----------------------------------------------------------------------------
# Parameter init (deterministic, mirrors the module's __init__):
#   weight_ih: xavier_uniform; weight_hh: torch default U(-1/sqrt(H), 1/sqrt(H));
#   biases: zeros. Gate-column order here is (i, f, o, g) — for i.i.d. random init
#   this is distributionally identical to torch's (i, f, g, o).
# ----------------------------------------------------------------------------
def xavier_uniform(key, shape):
    fan_in, fan_out = shape[0], shape[1]
    bound = math.sqrt(6.0 / (fan_in + fan_out))
    return jax.random.uniform(key, shape, jnp.float32, -bound, bound)


def init_mann_params(key, num_classes, input_size, model_size):
    d1 = input_size + num_classes
    h1 = model_size
    d2 = model_size
    h2 = num_classes
    k1, k2, k3, k4 = jax.random.split(key, 4)
    std1 = 1.0 / math.sqrt(h1)
    std2 = 1.0 / math.sqrt(h2)
    return {
        "w_ih1": xavier_uniform(k1, (d1, 4 * h1)),
        "w_hh1": jax.random.uniform(k2, (h1, 4 * h1), jnp.float32, -std1, std1),
        "b1": jnp.zeros((1, 4 * h1), jnp.float32),
        "w_ih2": xavier_uniform(k3, (d2, 4 * h2)),
        "w_hh2": jax.random.uniform(k4, (h2, 4 * h2), jnp.float32, -std2, std2),
        "b2": jnp.zeros((1, 4 * h2), jnp.float32),
    }


# ----------------------------------------------------------------------------
# MANN forward (input assembly in plain JAX, both recurrences fused in Pallas).
# ----------------------------------------------------------------------------
def _assemble_inputs(input_images, input_labels):
    b, k1, n, d = input_images.shape
    k = k1 - 1
    train_images = input_images[:, :-1].reshape(b, n * k, d)
    train_labels = input_labels[:, :-1].reshape(b, n * k, n)
    train_inps = jnp.concatenate([train_images, train_labels], axis=2)
    test_images = input_images[:, -1:].reshape(b, n, d)
    test_labels = jnp.zeros((b, n, n), dtype=input_images.dtype)
    test_inps = jnp.concatenate([test_images, test_labels], axis=2)
    all_inps = jnp.concatenate([train_inps, test_inps], axis=1)   # [B, T, D+N]
    return all_inps, b, k, n, d


def mann_forward(params, input_images, input_labels):
    """
    input_images: [B, K+1, N, D] flattened images
    input_labels: [B, K+1, N, N] one-hot labels
    returns:      [B, K+1, N, N] class predictions
    """
    all_inps, b, k, n, d = _assemble_inputs(input_images, input_labels)
    T = all_inps.shape[1]                                          # (K+1)*N
    # Time-major flat rows (row = t*B + b), single dense input slab for the kernel.
    x2d = jnp.transpose(all_inps, (1, 0, 2)).astype(jnp.float32).reshape(T * b, d + n)
    out_flat = mann_fused_pallas(x2d, T, b, params)                # [B, T*N]
    return out_flat.reshape(b, T, n).reshape(b, k + 1, n, n)


# ----------------------------------------------------------------------------
# Pure-JAX reference (for correctness check only). Same (i, f, o, g) column
# convention; standard per-step LSTM with f32 HIGHEST-precision matmuls.
# ----------------------------------------------------------------------------
def lstm_ref(x_tm, w_ih_t, w_hh_t, b):
    T, B, _ = x_tm.shape
    H = w_hh_t.shape[0]

    def step(carry, x_t):
        h, c = carry
        gates = (jnp.dot(x_t, w_ih_t, precision=lax.Precision.HIGHEST)
                 + jnp.dot(h, w_hh_t, precision=lax.Precision.HIGHEST)
                 + b)
        i = jax.nn.sigmoid(gates[:, 0 * H:1 * H])
        f = jax.nn.sigmoid(gates[:, 1 * H:2 * H])
        o = jax.nn.sigmoid(gates[:, 2 * H:3 * H])
        g = jnp.tanh(gates[:, 3 * H:4 * H])
        c = f * c + i * g
        h = o * jnp.tanh(c)
        return (h, c), h

    init = (jnp.zeros((B, H), jnp.float32), jnp.zeros((B, H), jnp.float32))
    _, hs = lax.scan(step, init, x_tm)
    return hs


def mann_forward_ref(params, input_images, input_labels):
    all_inps, b, k, n, _ = _assemble_inputs(input_images, input_labels)
    x_tm = jnp.transpose(all_inps, (1, 0, 2)).astype(jnp.float32)  # [T, B, D+N]
    o1 = lstm_ref(x_tm, params["w_ih1"], params["w_hh1"], params["b1"])
    o2 = lstm_ref(o1, params["w_ih2"], params["w_hh2"], params["b2"])
    return jnp.transpose(o2, (1, 0, 2)).reshape(b, k + 1, n, n)


if __name__ == "__main__":
    # Small, forward-consistent shapes:
    #   B=2 episodes, K+1=3 samples/class, N=4 classes, flattened image dim 64,
    #   model_size 32  ->  T = N*(K+1) = 12 timesteps.
    B = 2
    num_classes = 4          # N
    samples_per_class = 3    # K+1
    input_size = 64          # flattened image dim (784 in the original)
    model_size = 32          # LSTM1 hidden size (128 in the original)

    key = jax.random.PRNGKey(0)
    kp, ki = jax.random.split(key)
    params = init_mann_params(kp, num_classes, input_size, model_size)

    input_images = jax.random.normal(
        ki, (B, samples_per_class, num_classes, input_size), dtype=jnp.float32
    )
    # One-hot ground-truth labels [B, K+1, N, N].
    input_labels = jnp.broadcast_to(
        jnp.eye(num_classes, dtype=jnp.float32),
        (B, samples_per_class, num_classes, num_classes),
    )

    fwd = jax.jit(mann_forward)
    out = jax.block_until_ready(fwd(params, input_images, input_labels))
    assert out.shape == (B, samples_per_class, num_classes, num_classes)

    ref = jax.block_until_ready(mann_forward_ref(params, input_images, input_labels))
    max_err = float(jnp.max(jnp.abs(out - ref)))
    assert max_err < 1e-3, f"mismatch vs reference: {max_err}"

    print("KERNEL_OK")
</pallas_src>

<mosaic_0001>
module attributes {stable_mosaic.version = 11 : i64} {
  func.func @mann_fused_kernel(%arg0: memref<24x68xf32, #tpu.memory_space<vmem>>, %arg1: memref<68x128xf32, #tpu.memory_space<vmem>>, %arg2: memref<32x128xf32, #tpu.memory_space<vmem>>, %arg3: memref<1x128xf32, #tpu.memory_space<vmem>>, %arg4: memref<32x16xf32, #tpu.memory_space<vmem>>, %arg5: memref<4x16xf32, #tpu.memory_space<vmem>>, %arg6: memref<1x16xf32, #tpu.memory_space<vmem>>, %arg7: memref<2x48xf32, #tpu.memory_space<vmem>>) attributes {dimension_semantics = [], scalar_prefetch = 0 : i64, scratch_operands = 0 : i64, tpu.core_type = #tpu.core_type<tc>} {
    %c0 = arith.constant 0 : index
    %c0_0 = arith.constant 0 : index
    %0 = vector.load %arg0[%c0, %c0_0] : memref<24x68xf32, #tpu.memory_space<vmem>>, vector<24x68xf32>
    %c0_1 = arith.constant 0 : index
    %c0_2 = arith.constant 0 : index
    %1 = vector.load %arg1[%c0_1, %c0_2] : memref<68x128xf32, #tpu.memory_space<vmem>>, vector<68x128xf32>
    %cst = arith.constant dense<0.000000e+00> : vector<24x128xf32>
    %2 = tpu.matmul %0, %1, %cst {dimension_numbers = #tpu.dot_dimension_numbers<[1], [0], [0], [1], [0, 0, 1, 1], [], []>} : vector<24x68xf32>, vector<68x128xf32>, vector<24x128xf32> -> vector<24x128xf32>
    %c0_3 = arith.constant 0 : index
    %c0_4 = arith.constant 0 : index
    %3 = vector.load %arg3[%c0_3, %c0_4] : memref<1x128xf32, #tpu.memory_space<vmem>>, vector<1x128xf32>
    %4 = vector.broadcast %3 : vector<1x128xf32> to vector<24x128xf32>
    %5 = arith.addf %2, %4 : vector<24x128xf32>
    %c0_5 = arith.constant 0 : index
    %c0_6 = arith.constant 0 : index
    %6 = vector.load %arg2[%c0_5, %c0_6] : memref<32x128xf32, #tpu.memory_space<vmem>>, vector<32x128xf32>
    %c0_7 = arith.constant 0 : index
    %c0_8 = arith.constant 0 : index
    %7 = vector.load %arg4[%c0_7, %c0_8] : memref<32x16xf32, #tpu.memory_space<vmem>>, vector<32x16xf32>
    %c0_9 = arith.constant 0 : index
    %c0_10 = arith.constant 0 : index
    %8 = vector.load %arg5[%c0_9, %c0_10] : memref<4x16xf32, #tpu.memory_space<vmem>>, vector<4x16xf32>
    %c0_11 = arith.constant 0 : index
    %c0_12 = arith.constant 0 : index
    %9 = vector.load %arg6[%c0_11, %c0_12] : memref<1x16xf32, #tpu.memory_space<vmem>>, vector<1x16xf32>
    %cst_13 = arith.constant 0.000000e+00 : f32
    %10 = vector.broadcast %cst_13 : f32 to vector<2x32xf32>
    %cst_14 = arith.constant 0.000000e+00 : f32
    %11 = vector.broadcast %cst_14 : f32 to vector<2x32xf32>
    %cst_15 = arith.constant 0.000000e+00 : f32
    %12 = vector.broadcast %cst_15 : f32 to vector<2x4xf32>
    %cst_16 = arith.constant 0.000000e+00 : f32
    %13 = vector.broadcast %cst_16 : f32 to vector<2x4xf32>
    %14 = vector.extract_strided_slice %5 {offsets = [0, 0], sizes = [2, 128], strides = [1, 1]} : vector<24x128xf32> to vector<2x128xf32>
    %cst_17 = arith.constant dense<0.000000e+00> : vector<2x128xf32>
    %15 = tpu.matmul %10, %6, %cst_17 {dimension_numbers = #tpu.dot_dimension_numbers<[1], [0], [0], [1], [0, 0, 1, 1], [], []>} : vector<2x32xf32>, vector<32x128xf32>, vector<2x128xf32> -> vector<2x128xf32>
    %16 = arith.addf %14, %15 : vector<2x128xf32>
    %17 = vector.extract_strided_slice %16 {offsets = [0, 0], sizes = [2, 96], strides = [1, 1]} : vector<2x128xf32> to vector<2x96xf32>
    %18 = arith.negf %17 : vector<2x96xf32>
    %19 = math.exp %18 : vector<2x96xf32>
    %cst_18 = arith.constant 1.000000e+00 : f32
    %20 = vector.broadcast %cst_18 : f32 to vector<2x96xf32>
    %21 = arith.addf %20, %19 : vector<2x96xf32>
    %22 = arith.divf %20, %21 : vector<2x96xf32>
    %23 = vector.extract_strided_slice %16 {offsets = [0, 96], sizes = [2, 32], strides = [1, 1]} : vector<2x128xf32> to vector<2x32xf32>
    %24 = math.tanh %23 : vector<2x32xf32>
    %25 = vector.extract_strided_slice %22 {offsets = [0, 32], sizes = [2, 32], strides = [1, 1]} : vector<2x96xf32> to vector<2x32xf32>
    %26 = arith.mulf %25, %11 : vector<2x32xf32>
    %27 = vector.extract_strided_slice %22 {offsets = [0, 0], sizes = [2, 32], strides = [1, 1]} : vector<2x96xf32> to vector<2x32xf32>
    %28 = arith.mulf %27, %24 : vector<2x32xf32>
    %29 = arith.addf %26, %28 : vector<2x32xf32>
    %30 = vector.extract_strided_slice %22 {offsets = [0, 64], sizes = [2, 32], strides = [1, 1]} : vector<2x96xf32> to vector<2x32xf32>
    %31 = math.tanh %29 : vector<2x32xf32>
    %32 = arith.mulf %30, %31 : vector<2x32xf32>
    %cst_19 = arith.constant dense<0.000000e+00> : vector<2x16xf32>
    %33 = tpu.matmul %32, %7, %cst_19 {dimension_numbers = #tpu.dot_dimension_numbers<[1], [0], [0], [1], [0, 0, 1, 1], [], []>} : vector<2x32xf32>, vector<32x16xf32>, vector<2x16xf32> -> vector<2x16xf32>
    %cst_20 = arith.constant dense<0.000000e+00> : vector<2x16xf32>
    %34 = tpu.matmul %12, %8, %cst_20 {dimension_numbers = #tpu.dot_dimension_numbers<[1], [0], [0], [1], [0, 0, 1, 1], [], []>} : vector<2x4xf32>, vector<4x16xf32>, vector<2x16xf32> -> vector<2x16xf32>
    %35 = arith.addf %33, %34 : vector<2x16xf32>
    %36 = vector.broadcast %9 : vector<1x16xf32> to vector<2x16xf32>
    %37 = arith.addf %35, %36 : vector<2x16xf32>
    %38 = vector.extract_strided_slice %37 {offsets = [0, 0], sizes = [2, 12], strides = [1, 1]} : vector<2x16xf32> to vector<2x12xf32>
    %39 = arith.negf %38 : vector<2x12xf32>
    %40 = math.exp %39 : vector<2x12xf32>
    %cst_21 = arith.constant 1.000000e+00 : f32
    %41 = vector.broadcast %cst_21 : f32 to vector<2x12xf32>
    %42 = arith.addf %41, %40 : vector<2x12xf32>
    %43 = arith.divf %41, %42 : vector<2x12xf32>
    %44 = vector.extract_strided_slice %37 {offsets = [0, 12], sizes = [2, 4], strides = [1, 1]} : vector<2x16xf32> to vector<2x4xf32>
    %45 = math.tanh %44 : vector<2x4xf32>
    %46 = vector.extract_strided_slice %43 {offsets = [0, 4], sizes = [2, 4], strides = [1, 1]} : vector<2x12xf32> to vector<2x4xf32>
    %47 = arith.mulf %46, %13 : vector<2x4xf32>
    %48 = vector.extract_strided_slice %43 {offsets = [0, 0], sizes = [2, 4], strides = [1, 1]} : vector<2x12xf32> to vector<2x4xf32>
    %49 = arith.mulf %48, %45 : vector<2x4xf32>
    %50 = arith.addf %47, %49 : vector<2x4xf32>
    %51 = vector.extract_strided_slice %43 {offsets = [0, 8], sizes = [2, 4], strides = [1, 1]} : vector<2x12xf32> to vector<2x4xf32>
    %52 = math.tanh %50 : vector<2x4xf32>
    %53 = arith.mulf %51, %52 : vector<2x4xf32>
    %c0_22 = arith.constant 0 : index
    %c0_23 = arith.constant 0 : index
    %54 = vector.load %arg7[%c0_22, %c0_23] : memref<2x48xf32, #tpu.memory_space<vmem>>, vector<2x4xf32>
    tpu.vector_store %arg7[%c0_22, %c0_23], %53 {strides = array<i32>} : memref<2x48xf32, #tpu.memory_space<vmem>>, vector<2x4xf32>,
    %55 = vector.extract_strided_slice %5 {offsets = [2, 0], sizes = [2, 128], strides = [1, 1]} : vector<24x128xf32> to vector<2x128xf32>
    %cst_24 = arith.constant dense<0.000000e+00> : vector<2x128xf32>
    %56 = tpu.matmul %32, %6, %cst_24 {dimension_numbers = #tpu.dot_dimension_numbers<[1], [0], [0], [1], [0, 0, 1, 1], [], []>} : vector<2x32xf32>, vector<32x128xf32>, vector<2x128xf32> -> vector<2x128xf32>
    %57 = arith.addf %55, %56 : vector<2x128xf32>
    %58 = vector.extract_strided_slice %57 {offsets = [0, 0], sizes = [2, 96], strides = [1, 1]} : vector<2x128xf32> to vector<2x96xf32>
    %59 = arith.negf %58 : vector<2x96xf32>
    %60 = math.exp %59 : vector<2x96xf32>
    %cst_25 = arith.constant 1.000000e+00 : f32
    %61 = vector.broadcast %cst_25 : f32 to vector<2x96xf32>
    %62 = arith.addf %61, %60 : vector<2x96xf32>
    %63 = arith.divf %61, %62 : vector<2x96xf32>
    %64 = vector.extract_strided_slice %57 {offsets = [0, 96], sizes = [2, 32], strides = [1, 1]} : vector<2x128xf32> to vector<2x32xf32>
    %65 = math.tanh %64 : vector<2x32xf32>
    %66 = vector.extract_strided_slice %63 {offsets = [0, 32], sizes = [2, 32], strides = [1, 1]} : vector<2x96xf32> to vector<2x32xf32>
    %67 = arith.mulf %66, %29 : vector<2x32xf32>
    %68 = vector.extract_strided_slice %63 {offsets = [0, 0], sizes = [2, 32], strides = [1, 1]} : vector<2x96xf32> to vector<2x32xf32>
    %69 = arith.mulf %68, %65 : vector<2x32xf32>
    %70 = arith.addf %67, %69 : vector<2x32xf32>
    %71 = vector.extract_strided_slice %63 {offsets = [0, 64], sizes = [2, 32], strides = [1, 1]} : vector<2x96xf32> to vector<2x32xf32>
    %72 = math.tanh %70 : vector<2x32xf32>
    %73 = arith.mulf %71, %72 : vector<2x32xf32>
    %cst_26 = arith.constant dense<0.000000e+00> : vector<2x16xf32>
    %74 = tpu.matmul %73, %7, %cst_26 {dimension_numbers = #tpu.dot_dimension_numbers<[1], [0], [0], [1], [0, 0, 1, 1], [], []>} : vector<2x32xf32>, vector<32x16xf32>, vector<2x16xf32> -> vector<2x16xf32>
    %cst_27 = arith.constant dense<0.000000e+00> : vector<2x16xf32>
    %75 = tpu.matmul %53, %8, %cst_27 {dimension_numbers = #tpu.dot_dimension_numbers<[1], [0], [0], [1], [0, 0, 1, 1], [], []>} : vector<2x4xf32>, vector<4x16xf32>, vector<2x16xf32> -> vector<2x16xf32>
    %76 = arith.addf %74, %75 : vector<2x16xf32>
    %77 = vector.broadcast %9 : vector<1x16xf32> to vector<2x16xf32>
    %78 = arith.addf %76, %77 : vector<2x16xf32>
    %79 = vector.extract_strided_slice %78 {offsets = [0, 0], sizes = [2, 12], strides = [1, 1]} : vector<2x16xf32> to vector<2x12xf32>
    %80 = arith.negf %79 : vector<2x12xf32>
    %81 = math.exp %80 : vector<2x12xf32>
    %cst_28 = arith.constant 1.000000e+00 : f32
    %82 = vector.broadcast %cst_28 : f32 to vector<2x12xf32>
    %83 = arith.addf %82, %81 : vector<2x12xf32>
    %84 = arith.divf %82, %83 : vector<2x12xf32>
    %85 = vector.extract_strided_slice %78 {offsets = [0, 12], sizes = [2, 4], strides = [1, 1]} : vector<2x16xf32> to vector<2x4xf32>
    %86 = math.tanh %85 : vector<2x4xf32>
    %87 = vector.extract_strided_slice %84 {offsets = [0, 4], sizes = [2, 4], strides = [1, 1]} : vector<2x12xf32> to vector<2x4xf32>
    %88 = arith.mulf %87, %50 : vector<2x4xf32>
    %89 = vector.extract_strided_slice %84 {offsets = [0, 0], sizes = [2, 4], strides = [1, 1]} : vector<2x12xf32> to vector<2x4xf32>
    %90 = arith.mulf %89, %86 : vector<2x4xf32>
    %91 = arith.addf %88, %90 : vector<2x4xf32>
    %92 = vector.extract_strided_slice %84 {offsets = [0, 8], sizes = [2, 4], strides = [1, 1]} : vector<2x12xf32> to vector<2x4xf32>
    %93 = math.tanh %91 : vector<2x4xf32>
    %94 = arith.mulf %92, %93 : vector<2x4xf32>
    %c0_29 = arith.constant 0 : index
    %c4 = arith.constant 4 : index
    %95 = vector.load %arg7[%c0_29, %c4] : memref<2x48xf32, #tpu.memory_space<vmem>>, vector<2x4xf32>
    tpu.vector_store %arg7[%c0_29, %c4], %94 {strides = array<i32>} : memref<2x48xf32, #tpu.memory_space<vmem>>, vector<2x4xf32>,
    %96 = vector.extract_strided_slice %5 {offsets = [4, 0], sizes = [2, 128], strides = [1, 1]} : vector<24x128xf32> to vector<2x128xf32>
    %cst_30 = arith.constant dense<0.000000e+00> : vector<2x128xf32>
    %97 = tpu.matmul %73, %6, %cst_30 {dimension_numbers = #tpu.dot_dimension_numbers<[1], [0], [0], [1], [0, 0, 1, 1], [], []>} : vector<2x32xf32>, vector<32x128xf32>, vector<2x128xf32> -> vector<2x128xf32>
    %98 = arith.addf %96, %97 : vector<2x128xf32>
    %99 = vector.extract_strided_slice %98 {offsets = [0, 0], sizes = [2, 96], strides = [1, 1]} : vector<2x128xf32> to vector<2x96xf32>
    %100 = arith.negf %99 : vector<2x96xf32>
    %101 = math.exp %100 : vector<2x96xf32>
    %cst_31 = arith.constant 1.000000e+00 : f32
    %102 = vector.broadcast %cst_31 : f32 to vector<2x96xf32>
    %103 = arith.addf %102, %101 : vector<2x96xf32>
    %104 = arith.divf %102, %103 : vector<2x96xf32>
    %105 = vector.extract_strided_slice %98 {offsets = [0, 96], sizes = [2, 32], strides = [1, 1]} : vector<2x128xf32> to vector<2x32xf32>
    %106 = math.tanh %105 : vector<2x32xf32>
    %107 = vector.extract_strided_slice %104 {offsets = [0, 32], sizes = [2, 32], strides = [1, 1]} : vector<2x96xf32> to vector<2x32xf32>
    %108 = arith.mulf %107, %70 : vector<2x32xf32>
    %109 = vector.extract_strided_slice %104 {offsets = [0, 0], sizes = [2, 32], strides = [1, 1]} : vector<2x96xf32> to vector<2x32xf32>
    %110 = arith.mulf %109, %106 : vector<2x32xf32>
    %111 = arith.addf %108, %110 : vector<2x32xf32>
    %112 = vector.extract_strided_slice %104 {offsets = [0, 64], sizes = [2, 32], strides = [1, 1]} : vector<2x96xf32> to vector<2x32xf32>
    %113 = math.tanh %111 : vector<2x32xf32>
    %114 = arith.mulf %112, %113 : vector<2x32xf32>
    %cst_32 = arith.constant dense<0.000000e+00> : vector<2x16xf32>
    %115 = tpu.matmul %114, %7, %cst_32 {dimension_numbers = #tpu.dot_dimension_numbers<[1], [0], [0], [1], [0, 0, 1, 1], [], []>} : vector<2x32xf32>, vector<32x16xf32>, vector<2x16xf32> -> vector<2x16xf32>
    %cst_33 = arith.constant dense<0.000000e+00> : vector<2x16xf32>
    %116 = tpu.matmul %94, %8, %cst_33 {dimension_numbers = #tpu.dot_dimension_numbers<[1], [0], [0], [1], [0, 0, 1, 1], [], []>} : vector<2x4xf32>, vector<4x16xf32>, vector<2x16xf32> -> vector<2x16xf32>
    %117 = arith.addf %115, %116 : vector<2x16xf32>
    %118 = vector.broadcast %9 : vector<1x16xf32> to vector<2x16xf32>
    %119 = arith.addf %117, %118 : vector<2x16xf32>
    %120 = vector.extract_strided_slice %119 {offsets = [0, 0], sizes = [2, 12], strides = [1, 1]} : vector<2x16xf32> to vector<2x12xf32>
    %121 = arith.negf %120 : vector<2x12xf32>
    %122 = math.exp %121 : vector<2x12xf32>
    %cst_34 = arith.constant 1.000000e+00 : f32
    %123 = vector.broadcast %cst_34 : f32 to vector<2x12xf32>
    %124 = arith.addf %123, %122 : vector<2x12xf32>
    %125 = arith.divf %123, %124 : vector<2x12xf32>
    %126 = vector.extract_strided_slice %119 {offsets = [0, 12], sizes = [2, 4], strides = [1, 1]} : vector<2x16xf32> to vector<2x4xf32>
    %127 = math.tanh %126 : vector<2x4xf32>
    %128 = vector.extract_strided_slice %125 {offsets = [0, 4], sizes = [2, 4], strides = [1, 1]} : vector<2x12xf32> to vector<2x4xf32>
    %129 = arith.mulf %128, %91 : vector<2x4xf32>
    %130 = vector.extract_strided_slice %125 {offsets = [0, 0], sizes = [2, 4], strides = [1, 1]} : vector<2x12xf32> to vector<2x4xf32>
    %131 = arith.mulf %130, %127 : vector<2x4xf32>
    %132 = arith.addf %129, %131 : vector<2x4xf32>
    %133 = vector.extract_strided_slice %125 {offsets = [0, 8], sizes = [2, 4], strides = [1, 1]} : vector<2x12xf32> to vector<2x4xf32>
    %134 = math.tanh %132 : vector<2x4xf32>
    %135 = arith.mulf %133, %134 : vector<2x4xf32>
    %c0_35 = arith.constant 0 : index
    %c8 = arith.constant 8 : index
    %136 = vector.load %arg7[%c0_35, %c8] : memref<2x48xf32, #tpu.memory_space<vmem>>, vector<2x4xf32>
    tpu.vector_store %arg7[%c0_35, %c8], %135 {strides = array<i32>} : memref<2x48xf32, #tpu.memory_space<vmem>>, vector<2x4xf32>,
    %137 = vector.extract_strided_slice %5 {offsets = [6, 0], sizes = [2, 128], strides = [1, 1]} : vector<24x128xf32> to vector<2x128xf32>
    %cst_36 = arith.constant dense<0.000000e+00> : vector<2x128xf32>
    %138 = tpu.matmul %114, %6, %cst_36 {dimension_numbers = #tpu.dot_dimension_numbers<[1], [0], [0], [1], [0, 0, 1, 1], [], []>} : vector<2x32xf32>, vector<32x128xf32>, vector<2x128xf32> -> vector<2x128xf32>
    %139 = arith.addf %137, %138 : vector<2x128xf32>
    %140 = vector.extract_strided_slice %139 {offsets = [0, 0], sizes = [2, 96], strides = [1, 1]} : vector<2x128xf32> to vector<2x96xf32>
    %141 = arith.negf %140 : vector<2x96xf32>
    %142 = math.exp %141 : vector<2x96xf32>
    %cst_37 = arith.constant 1.000000e+00 : f32
    %143 = vector.broadcast %cst_37 : f32 to vector<2x96xf32>
    %144 = arith.addf %143, %142 : vector<2x96xf32>
    %145 = arith.divf %143, %144 : vector<2x96xf32>
    %146 = vector.extract_strided_slice %139 {offsets = [0, 96], sizes = [2, 32], strides = [1, 1]} : vector<2x128xf32> to vector<2x32xf32>
    %147 = math.tanh %146 : vector<2x32xf32>
    %148 = vector.extract_strided_slice %145 {offsets = [0, 32], sizes = [2, 32], strides = [1, 1]} : vector<2x96xf32> to vector<2x32xf32>
    %149 = arith.mulf %148, %111 : vector<2x32xf32>
    %150 = vector.extract_strided_slice %145 {offsets = [0, 0], sizes = [2, 32], strides = [1, 1]} : vector<2x96xf32> to vector<2x32xf32>
    %151 = arith.mulf %150, %147 : vector<2x32xf32>
    %152 = arith.addf %149, %151 : vector<2x32xf32>
    %153 = vector.extract_strided_slice %145 {offsets = [0, 64], sizes = [2, 32], strides = [1, 1]} : vector<2x96xf32> to vector<2x32xf32>
    %154 = math.tanh %152 : vector<2x32xf32>
    %155 = arith.mulf %153, %154 : vector<2x32xf32>
    %cst_38 = arith.constant dense<0.000000e+00> : vector<2x16xf32>
    %156 = tpu.matmul %155, %7, %cst_38 {dimension_numbers = #tpu.dot_dimension_numbers<[1], [0], [0], [1], [0, 0, 1, 1], [], []>} : vector<2x32xf32>, vector<32x16xf32>, vector<2x16xf32> -> vector<2x16xf32>
    %cst_39 = arith.constant dense<0.000000e+00> : vector<2x16xf32>
    %157 = tpu.matmul %135, %8, %cst_39 {dimension_numbers = #tpu.dot_dimension_numbers<[1], [0], [0], [1], [0, 0, 1, 1], [], []>} : vector<2x4xf32>, vector<4x16xf32>, vector<2x16xf32> -> vector<2x16xf32>
    %158 = arith.addf %156, %157 : vector<2x16xf32>
    %159 = vector.broadcast %9 : vector<1x16xf32> to vector<2x16xf32>
    %160 = arith.addf %158, %159 : vector<2x16xf32>
    %161 = vector.extract_strided_slice %160 {offsets = [0, 0], sizes = [2, 12], strides = [1, 1]} : vector<2x16xf32> to vector<2x12xf32>
    %162 = arith.negf %161 : vector<2x12xf32>
    %163 = math.exp %162 : vector<2x12xf32>
    %cst_40 = arith.constant 1.000000e+00 : f32
    %164 = vector.broadcast %cst_40 : f32 to vector<2x12xf32>
    %165 = arith.addf %164, %163 : vector<2x12xf32>
    %166 = arith.divf %164, %165 : vector<2x12xf32>
    %167 = vector.extract_strided_slice %160 {offsets = [0, 12], sizes = [2, 4], strides = [1, 1]} : vector<2x16xf32> to vector<2x4xf32>
    %168 = math.tanh %167 : vector<2x4xf32>
    %169 = vector.extract_strided_slice %166 {offsets = [0, 4], sizes = [2, 4], strides = [1, 1]} : vector<2x12xf32> to vector<2x4xf32>
    %170 = arith.mulf %169, %132 : vector<2x4xf32>
    %171 = vector.extract_strided_slice %166 {offsets = [0, 0], sizes = [2, 4], strides = [1, 1]} : vector<2x12xf32> to vector<2x4xf32>
    %172 = arith.mulf %171, %168 : vector<2x4xf32>
    %173 = arith.addf %170, %172 : vector<2x4xf32>
    %174 = vector.extract_strided_slice %166 {offsets = [0, 8], sizes = [2, 4], strides = [1, 1]} : vector<2x12xf32> to vector<2x4xf32>
    %175 = math.tanh %173 : vector<2x4xf32>
    %176 = arith.mulf %174, %175 : vector<2x4xf32>
    %c0_41 = arith.constant 0 : index
    %c12 = arith.constant 12 : index
    %177 = vector.load %arg7[%c0_41, %c12] : memref<2x48xf32, #tpu.memory_space<vmem>>, vector<2x4xf32>
    tpu.vector_store %arg7[%c0_41, %c12], %176 {strides = array<i32>} : memref<2x48xf32, #tpu.memory_space<vmem>>, vector<2x4xf32>,
    %178 = vector.extract_strided_slice %5 {offsets = [8, 0], sizes = [2, 128], strides = [1, 1]} : vector<24x128xf32> to vector<2x128xf32>
    %cst_42 = arith.constant dense<0.000000e+00> : vector<2x128xf32>
    %179 = tpu.matmul %155, %6, %cst_42 {dimension_numbers = #tpu.dot_dimension_numbers<[1], [0], [0], [1], [0, 0, 1, 1], [], []>} : vector<2x32xf32>, vector<32x128xf32>, vector<2x128xf32> -> vector<2x128xf32>
    %180 = arith.addf %178, %179 : vector<2x128xf32>
    %181 = vector.extract_strided_slice %180 {offsets = [0, 0], sizes = [2, 96], strides = [1, 1]} : vector<2x128xf32> to vector<2x96xf32>
    %182 = arith.negf %181 : vector<2x96xf32>
    %183 = math.exp %182 : vector<2x96xf32>
    %cst_43 = arith.constant 1.000000e+00 : f32
    %184 = vector.broadcast %cst_43 : f32 to vector<2x96xf32>
    %185 = arith.addf %184, %183 : vector<2x96xf32>
    %186 = arith.divf %184, %185 : vector<2x96xf32>
    %187 = vector.extract_strided_slice %180 {offsets = [0, 96], sizes = [2, 32], strides = [1, 1]} : vector<2x128xf32> to vector<2x32xf32>
    %188 = math.tanh %187 : vector<2x32xf32>
    %189 = vector.extract_strided_slice %186 {offsets = [0, 32], sizes = [2, 32], strides = [1, 1]} : vector<2x96xf32> to vector<2x32xf32>
    %190 = arith.mulf %189, %152 : vector<2x32xf32>
    %191 = vector.extract_strided_slice %186 {offsets = [0, 0], sizes = [2, 32], strides = [1, 1]} : vector<2x96xf32> to vector<2x32xf32>
    %192 = arith.mulf %191, %188 : vector<2x32xf32>
    %193 = arith.addf %190, %192 : vector<2x32xf32>
    %194 = vector.extract_strided_slice %186 {offsets = [0, 64], sizes = [2, 32], strides = [1, 1]} : vector<2x96xf32> to vector<2x32xf32>
    %195 = math.tanh %193 : vector<2x32xf32>
    %196 = arith.mulf %194, %195 : vector<2x32xf32>
    %cst_44 = arith.constant dense<0.000000e+00> : vector<2x16xf32>
    %197 = tpu.matmul %196, %7, %cst_44 {dimension_numbers = #tpu.dot_dimension_numbers<[1], [0], [0], [1], [0, 0, 1, 1], [], []>} : vector<2x32xf32>, vector<32x16xf32>, vector<2x16xf32> -> vector<2x16xf32>
    %cst_45 = arith.constant dense<0.000000e+00> : vector<2x16xf32>
    %198 = tpu.matmul %176, %8, %cst_45 {dimension_numbers = #tpu.dot_dimension_numbers<[1], [0], [0], [1], [0, 0, 1, 1], [], []>} : vector<2x4xf32>, vector<4x16xf32>, vector<2x16xf32> -> vector<2x16xf32>
    %199 = arith.addf %197, %198 : vector<2x16xf32>
    %200 = vector.broadcast %9 : vector<1x16xf32> to vector<2x16xf32>
    %201 = arith.addf %199, %200 : vector<2x16xf32>
    %202 = vector.extract_strided_slice %201 {offsets = [0, 0], sizes = [2, 12], strides = [1, 1]} : vector<2x16xf32> to vector<2x12xf32>
    %203 = arith.negf %202 : vector<2x12xf32>
    %204 = math.exp %203 : vector<2x12xf32>
    %cst_46 = arith.constant 1.000000e+00 : f32
    %205 = vector.broadcast %cst_46 : f32 to vector<2x12xf32>
    %206 = arith.addf %205, %204 : vector<2x12xf32>
    %207 = arith.divf %205, %206 : vector<2x12xf32>
    %208 = vector.extract_strided_slice %201 {offsets = [0, 12], sizes = [2, 4], strides = [1, 1]} : vector<2x16xf32> to vector<2x4xf32>
    %209 = math.tanh %208 : vector<2x4xf32>
    %210 = vector.extract_strided_slice %207 {offsets = [0, 4], sizes = [2, 4], strides = [1, 1]} : vector<2x12xf32> to vector<2x4xf32>
    %211 = arith.mulf %210, %173 : vector<2x4xf32>
    %212 = vector.extract_strided_slice %207 {offsets = [0, 0], sizes = [2, 4], strides = [1, 1]} : vector<2x12xf32> to vector<2x4xf32>
    %213 = arith.mulf %212, %209 : vector<2x4xf32>
    %214 = arith.addf %211, %213 : vector<2x4xf32>
    %215 = vector.extract_strided_slice %207 {offsets = [0, 8], sizes = [2, 4], strides = [1, 1]} : vector<2x12xf32> to vector<2x4xf32>
    %216 = math.tanh %214 : vector<2x4xf32>
    %217 = arith.mulf %215, %216 : vector<2x4xf32>
    %c0_47 = arith.constant 0 : index
    %c16 = arith.constant 16 : index
    %218 = vector.load %arg7[%c0_47, %c16] : memref<2x48xf32, #tpu.memory_space<vmem>>, vector<2x4xf32>
    tpu.vector_store %arg7[%c0_47, %c16], %217 {strides = array<i32>} : memref<2x48xf32, #tpu.memory_space<vmem>>, vector<2x4xf32>,
    %219 = vector.extract_strided_slice %5 {offsets = [10, 0], sizes = [2, 128], strides = [1, 1]} : vector<24x128xf32> to vector<2x128xf32>
    %cst_48 = arith.constant dense<0.000000e+00> : vector<2x128xf32>
    %220 = tpu.matmul %196, %6, %cst_48 {dimension_numbers = #tpu.dot_dimension_numbers<[1], [0], [0], [1], [0, 0, 1, 1], [], []>} : vector<2x32xf32>, vector<32x128xf32>, vector<2x128xf32> -> vector<2x128xf32>
    %221 = arith.addf %219, %220 : vector<2x128xf32>
    %222 = vector.extract_strided_slice %221 {offsets = [0, 0], sizes = [2, 96], strides = [1, 1]} : vector<2x128xf32> to vector<2x96xf32>
    %223 = arith.negf %222 : vector<2x96xf32>
    %224 = math.exp %223 : vector<2x96xf32>
    %cst_49 = arith.constant 1.000000e+00 : f32
    %225 = vector.broadcast %cst_49 : f32 to vector<2x96xf32>
    %226 = arith.addf %225, %224 : vector<2x96xf32>
    %227 = arith.divf %225, %226 : vector<2x96xf32>
    %228 = vector.extract_strided_slice %221 {offsets = [0, 96], sizes = [2, 32], strides = [1, 1]} : vector<2x128xf32> to vector<2x32xf32>
    %229 = math.tanh %228 : vector<2x32xf32>
    %230 = vector.extract_strided_slice %227 {offsets = [0, 32], sizes = [2, 32], strides = [1, 1]} : vector<2x96xf32> to vector<2x32xf32>
    %231 = arith.mulf %230, %193 : vector<2x32xf32>
    %232 = vector.extract_strided_slice %227 {offsets = [0, 0], sizes = [2, 32], strides = [1, 1]} : vector<2x96xf32> to vector<2x32xf32>
    %233 = arith.mulf %232, %229 : vector<2x32xf32>
    %234 = arith.addf %231, %233 : vector<2x32xf32>
    %235 = vector.extract_strided_slice %227 {offsets = [0, 64], sizes = [2, 32], strides = [1, 1]} : vector<2x96xf32> to vector<2x32xf32>
    %236 = math.tanh %234 : vector<2x32xf32>
    %237 = arith.mulf %235, %236 : vector<2x32xf32>
    %cst_50 = arith.constant dense<0.000000e+00> : vector<2x16xf32>
    %238 = tpu.matmul %237, %7, %cst_50 {dimension_numbers = #tpu.dot_dimension_numbers<[1], [0], [0], [1], [0, 0, 1, 1], [], []>} : vector<2x32xf32>, vector<32x16xf32>, vector<2x16xf32> -> vector<2x16xf32>
    %cst_51 = arith.constant dense<0.000000e+00> : vector<2x16xf32>
    %239 = tpu.matmul %217, %8, %cst_51 {dimension_numbers = #tpu.dot_dimension_numbers<[1], [0], [0], [1], [0, 0, 1, 1], [], []>} : vector<2x4xf32>, vector<4x16xf32>, vector<2x16xf32> -> vector<2x16xf32>
    %240 = arith.addf %238, %239 : vector<2x16xf32>
    %241 = vector.broadcast %9 : vector<1x16xf32> to vector<2x16xf32>
    %242 = arith.addf %240, %241 : vector<2x16xf32>
    %243 = vector.extract_strided_slice %242 {offsets = [0, 0], sizes = [2, 12], strides = [1, 1]} : vector<2x16xf32> to vector<2x12xf32>
    %244 = arith.negf %243 : vector<2x12xf32>
    %245 = math.exp %244 : vector<2x12xf32>
    %cst_52 = arith.constant 1.000000e+00 : f32
    %246 = vector.broadcast %cst_52 : f32 to vector<2x12xf32>
    %247 = arith.addf %246, %245 : vector<2x12xf32>
    %248 = arith.divf %246, %247 : vector<2x12xf32>
    %249 = vector.extract_strided_slice %242 {offsets = [0, 12], sizes = [2, 4], strides = [1, 1]} : vector<2x16xf32> to vector<2x4xf32>
    %250 = math.tanh %249 : vector<2x4xf32>
    %251 = vector.extract_strided_slice %248 {offsets = [0, 4], sizes = [2, 4], strides = [1, 1]} : vector<2x12xf32> to vector<2x4xf32>
    %252 = arith.mulf %251, %214 : vector<2x4xf32>
    %253 = vector.extract_strided_slice %248 {offsets = [0, 0], sizes = [2, 4], strides = [1, 1]} : vector<2x12xf32> to vector<2x4xf32>
    %254 = arith.mulf %253, %250 : vector<2x4xf32>
    %255 = arith.addf %252, %254 : vector<2x4xf32>
    %256 = vector.extract_strided_slice %248 {offsets = [0, 8], sizes = [2, 4], strides = [1, 1]} : vector<2x12xf32> to vector<2x4xf32>
    %257 = math.tanh %255 : vector<2x4xf32>
    %258 = arith.mulf %256, %257 : vector<2x4xf32>
    %c0_53 = arith.constant 0 : index
    %c20 = arith.constant 20 : index
    %259 = vector.load %arg7[%c0_53, %c20] : memref<2x48xf32, #tpu.memory_space<vmem>>, vector<2x4xf32>
    tpu.vector_store %arg7[%c0_53, %c20], %258 {strides = array<i32>} : memref<2x48xf32, #tpu.memory_space<vmem>>, vector<2x4xf32>,
    %260 = vector.extract_strided_slice %5 {offsets = [12, 0], sizes = [2, 128], strides = [1, 1]} : vector<24x128xf32> to vector<2x128xf32>
    %cst_54 = arith.constant dense<0.000000e+00> : vector<2x128xf32>
    %261 = tpu.matmul %237, %6, %cst_54 {dimension_numbers = #tpu.dot_dimension_numbers<[1], [0], [0], [1], [0, 0, 1, 1], [], []>} : vector<2x32xf32>, vector<32x128xf32>, vector<2x128xf32> -> vector<2x128xf32>
    %262 = arith.addf %260, %261 : vector<2x128xf32>
    %263 = vector.extract_strided_slice %262 {offsets = [0, 0], sizes = [2, 96], strides = [1, 1]} : vector<2x128xf32> to vector<2x96xf32>
    %264 = arith.negf %263 : vector<2x96xf32>
    %265 = math.exp %264 : vector<2x96xf32>
    %cst_55 = arith.constant 1.000000e+00 : f32
    %266 = vector.broadcast %cst_55 : f32 to vector<2x96xf32>
    %267 = arith.addf %266, %265 : vector<2x96xf32>
    %268 = arith.divf %266, %267 : vector<2x96xf32>
    %269 = vector.extract_strided_slice %262 {offsets = [0, 96], sizes = [2, 32], strides = [1, 1]} : vector<2x128xf32> to vector<2x32xf32>
    %270 = math.tanh %269 : vector<2x32xf32>
    %271 = vector.extract_strided_slice %268 {offsets = [0, 32], sizes = [2, 32], strides = [1, 1]} : vector<2x96xf32> to vector<2x32xf32>
    %272 = arith.mulf %271, %234 : vector<2x32xf32>
    %273 = vector.extract_strided_slice %268 {offsets = [0, 0], sizes = [2, 32], strides = [1, 1]} : vector<2x96xf32> to vector<2x32xf32>
    %274 = arith.mulf %273, %270 : vector<2x32xf32>
    %275 = arith.addf %272, %274 : vector<2x32xf32>
    %276 = vector.extract_strided_slice %268 {offsets = [0, 64], sizes = [2, 32], strides = [1, 1]} : vector<2x96xf32> to vector<2x32xf32>
    %277 = math.tanh %275 : vector<2x32xf32>
    %278 = arith.mulf %276, %277 : vector<2x32xf32>
    %cst_56 = arith.constant dense<0.000000e+00> : vector<2x16xf32>
    %279 = tpu.matmul %278, %7, %cst_56 {dimension_numbers = #tpu.dot_dimension_numbers<[1], [0], [0], [1], [0, 0, 1, 1], [], []>} : vector<2x32xf32>, vector<32x16xf32>, vector<2x16xf32> -> vector<2x16xf32>
    %cst_57 = arith.constant dense<0.000000e+00> : vector<2x16xf32>
    %280 = tpu.matmul %258, %8, %cst_57 {dimension_numbers = #tpu.dot_dimension_numbers<[1], [0], [0], [1], [0, 0, 1, 1], [], []>} : vector<2x4xf32>, vector<4x16xf32>, vector<2x16xf32> -> vector<2x16xf32>
    %281 = arith.addf %279, %280 : vector<2x16xf32>
    %282 = vector.broadcast %9 : vector<1x16xf32> to vector<2x16xf32>
    %283 = arith.addf %281, %282 : vector<2x16xf32>
    %284 = vector.extract_strided_slice %283 {offsets = [0, 0], sizes = [2, 12], strides = [1, 1]} : vector<2x16xf32> to vector<2x12xf32>
    %285 = arith.negf %284 : vector<2x12xf32>
    %286 = math.exp %285 : vector<2x12xf32>
    %cst_58 = arith.constant 1.000000e+00 : f32
    %287 = vector.broadcast %cst_58 : f32 to vector<2x12xf32>
    %288 = arith.addf %287, %286 : vector<2x12xf32>
    %289 = arith.divf %287, %288 : vector<2x12xf32>
    %290 = vector.extract_strided_slice %283 {offsets = [0, 12], sizes = [2, 4], strides = [1, 1]} : vector<2x16xf32> to vector<2x4xf32>
    %291 = math.tanh %290 : vector<2x4xf32>
    %292 = vector.extract_strided_slice %289 {offsets = [0, 4], sizes = [2, 4], strides = [1, 1]} : vector<2x12xf32> to vector<2x4xf32>
    %293 = arith.mulf %292, %255 : vector<2x4xf32>
    %294 = vector.extract_strided_slice %289 {offsets = [0, 0], sizes = [2, 4], strides = [1, 1]} : vector<2x12xf32> to vector<2x4xf32>
    %295 = arith.mulf %294, %291 : vector<2x4xf32>
    %296 = arith.addf %293, %295 : vector<2x4xf32>
    %297 = vector.extract_strided_slice %289 {offsets = [0, 8], sizes = [2, 4], strides = [1, 1]} : vector<2x12xf32> to vector<2x4xf32>
    %298 = math.tanh %296 : vector<2x4xf32>
    %299 = arith.mulf %297, %298 : vector<2x4xf32>
    %c0_59 = arith.constant 0 : index
    %c24 = arith.constant 24 : index
    %300 = vector.load %arg7[%c0_59, %c24] : memref<2x48xf32, #tpu.memory_space<vmem>>, vector<2x4xf32>
    tpu.vector_store %arg7[%c0_59, %c24], %299 {strides = array<i32>} : memref<2x48xf32, #tpu.memory_space<vmem>>, vector<2x4xf32>,
    %301 = vector.extract_strided_slice %5 {offsets = [14, 0], sizes = [2, 128], strides = [1, 1]} : vector<24x128xf32> to vector<2x128xf32>
    %cst_60 = arith.constant dense<0.000000e+00> : vector<2x128xf32>
    %302 = tpu.matmul %278, %6, %cst_60 {dimension_numbers = #tpu.dot_dimension_numbers<[1], [0], [0], [1], [0, 0, 1, 1], [], []>} : vector<2x32xf32>, vector<32x128xf32>, vector<2x128xf32> -> vector<2x128xf32>
    %303 = arith.addf %301, %302 : vector<2x128xf32>
    %304 = vector.extract_strided_slice %303 {offsets = [0, 0], sizes = [2, 96], strides = [1, 1]} : vector<2x128xf32> to vector<2x96xf32>
    %305 = arith.negf %304 : vector<2x96xf32>
    %306 = math.exp %305 : vector<2x96xf32>
    %cst_61 = arith.constant 1.000000e+00 : f32
    %307 = vector.broadcast %cst_61 : f32 to vector<2x96xf32>
    %308 = arith.addf %307, %306 : vector<2x96xf32>
    %309 = arith.divf %307, %308 : vector<2x96xf32>
    %310 = vector.extract_strided_slice %303 {offsets = [0, 96], sizes = [2, 32], strides = [1, 1]} : vector<2x128xf32> to vector<2x32xf32>
    %311 = math.tanh %310 : vector<2x32xf32>
    %312 = vector.extract_strided_slice %309 {offsets = [0, 32], sizes = [2, 32], strides = [1, 1]} : vector<2x96xf32> to vector<2x32xf32>
    %313 = arith.mulf %312, %275 : vector<2x32xf32>
    %314 = vector.extract_strided_slice %309 {offsets = [0, 0], sizes = [2, 32], strides = [1, 1]} : vector<2x96xf32> to vector<2x32xf32>
    %315 = arith.mulf %314, %311 : vector<2x32xf32>
    %316 = arith.addf %313, %315 : vector<2x32xf32>
    %317 = vector.extract_strided_slice %309 {offsets = [0, 64], sizes = [2, 32], strides = [1, 1]} : vector<2x96xf32> to vector<2x32xf32>
    %318 = math.tanh %316 : vector<2x32xf32>
    %319 = arith.mulf %317, %318 : vector<2x32xf32>
    %cst_62 = arith.constant dense<0.000000e+00> : vector<2x16xf32>
    %320 = tpu.matmul %319, %7, %cst_62 {dimension_numbers = #tpu.dot_dimension_numbers<[1], [0], [0], [1], [0, 0, 1, 1], [], []>} : vector<2x32xf32>, vector<32x16xf32>, vector<2x16xf32> -> vector<2x16xf32>
    %cst_63 = arith.constant dense<0.000000e+00> : vector<2x16xf32>
    %321 = tpu.matmul %299, %8, %cst_63 {dimension_numbers = #tpu.dot_dimension_numbers<[1], [0], [0], [1], [0, 0, 1, 1], [], []>} : vector<2x4xf32>, vector<4x16xf32>, vector<2x16xf32> -> vector<2x16xf32>
    %322 = arith.addf %320, %321 : vector<2x16xf32>
    %323 = vector.broadcast %9 : vector<1x16xf32> to vector<2x16xf32>
    %324 = arith.addf %322, %323 : vector<2x16xf32>
    %325 = vector.extract_strided_slice %324 {offsets = [0, 0], sizes = [2, 12], strides = [1, 1]} : vector<2x16xf32> to vector<2x12xf32>
    %326 = arith.negf %325 : vector<2x12xf32>
    %327 = math.exp %326 : vector<2x12xf32>
    %cst_64 = arith.constant 1.000000e+00 : f32
    %328 = vector.broadcast %cst_64 : f32 to vector<2x12xf32>
    %329 = arith.addf %328, %327 : vector<2x12xf32>
    %330 = arith.divf %328, %329 : vector<2x12xf32>
    %331 = vector.extract_strided_slice %324 {offsets = [0, 12], sizes = [2, 4], strides = [1, 1]} : vector<2x16xf32> to vector<2x4xf32>
    %332 = math.tanh %331 : vector<2x4xf32>
    %333 = vector.extract_strided_slice %330 {offsets = [0, 4], sizes = [2, 4], strides = [1, 1]} : vector<2x12xf32> to vector<2x4xf32>
    %334 = arith.mulf %333, %296 : vector<2x4xf32>
    %335 = vector.extract_strided_slice %330 {offsets = [0, 0], sizes = [2, 4], strides = [1, 1]} : vector<2x12xf32> to vector<2x4xf32>
    %336 = arith.mulf %335, %332 : vector<2x4xf32>
    %337 = arith.addf %334, %336 : vector<2x4xf32>
    %338 = vector.extract_strided_slice %330 {offsets = [0, 8], sizes = [2, 4], strides = [1, 1]} : vector<2x12xf32> to vector<2x4xf32>
    %339 = math.tanh %337 : vector<2x4xf32>
    %340 = arith.mulf %338, %339 : vector<2x4xf32>
    %c0_65 = arith.constant 0 : index
    %c28 = arith.constant 28 : index
    %341 = vector.load %arg7[%c0_65, %c28] : memref<2x48xf32, #tpu.memory_space<vmem>>, vector<2x4xf32>
    tpu.vector_store %arg7[%c0_65, %c28], %340 {strides = array<i32>} : memref<2x48xf32, #tpu.memory_space<vmem>>, vector<2x4xf32>,
    %342 = vector.extract_strided_slice %5 {offsets = [16, 0], sizes = [2, 128], strides = [1, 1]} : vector<24x128xf32> to vector<2x128xf32>
    %cst_66 = arith.constant dense<0.000000e+00> : vector<2x128xf32>
    %343 = tpu.matmul %319, %6, %cst_66 {dimension_numbers = #tpu.dot_dimension_numbers<[1], [0], [0], [1], [0, 0, 1, 1], [], []>} : vector<2x32xf32>, vector<32x128xf32>, vector<2x128xf32> -> vector<2x128xf32>
    %344 = arith.addf %342, %343 : vector<2x128xf32>
    %345 = vector.extract_strided_slice %344 {offsets = [0, 0], sizes = [2, 96], strides = [1, 1]} : vector<2x128xf32> to vector<2x96xf32>
    %346 = arith.negf %345 : vector<2x96xf32>
    %347 = math.exp %346 : vector<2x96xf32>
    %cst_67 = arith.constant 1.000000e+00 : f32
    %348 = vector.broadcast %cst_67 : f32 to vector<2x96xf32>
    %349 = arith.addf %348, %347 : vector<2x96xf32>
    %350 = arith.divf %348, %349 : vector<2x96xf32>
    %351 = vector.extract_strided_slice %344 {offsets = [0, 96], sizes = [2, 32], strides = [1, 1]} : vector<2x128xf32> to vector<2x32xf32>
    %352 = math.tanh %351 : vector<2x32xf32>
    %353 = vector.extract_strided_slice %350 {offsets = [0, 32], sizes = [2, 32], strides = [1, 1]} : vector<2x96xf32> to vector<2x32xf32>
    %354 = arith.mulf %353, %316 : vector<2x32xf32>
    %355 = vector.extract_strided_slice %350 {offsets = [0, 0], sizes = [2, 32], strides = [1, 1]} : vector<2x96xf32> to vector<2x32xf32>
    %356 = arith.mulf %355, %352 : vector<2x32xf32>
    %357 = arith.addf %354, %356 : vector<2x32xf32>
    %358 = vector.extract_strided_slice %350 {offsets = [0, 64], sizes = [2, 32], strides = [1, 1]} : vector<2x96xf32> to vector<2x32xf32>
    %359 = math.tanh %357 : vector<2x32xf32>
    %360 = arith.mulf %358, %359 : vector<2x32xf32>
    %cst_68 = arith.constant dense<0.000000e+00> : vector<2x16xf32>
    %361 = tpu.matmul %360, %7, %cst_68 {dimension_numbers = #tpu.dot_dimension_numbers<[1], [0], [0], [1], [0, 0, 1, 1], [], []>} : vector<2x32xf32>, vector<32x16xf32>, vector<2x16xf32> -> vector<2x16xf32>
    %cst_69 = arith.constant dense<0.000000e+00> : vector<2x16xf32>
    %362 = tpu.matmul %340, %8, %cst_69 {dimension_numbers = #tpu.dot_dimension_numbers<[1], [0], [0], [1], [0, 0, 1, 1], [], []>} : vector<2x4xf32>, vector<4x16xf32>, vector<2x16xf32> -> vector<2x16xf32>
    %363 = arith.addf %361, %362 : vector<2x16xf32>
    %364 = vector.broadcast %9 : vector<1x16xf32> to vector<2x16xf32>
    %365 = arith.addf %363, %364 : vector<2x16xf32>
    %366 = vector.extract_strided_slice %365 {offsets = [0, 0], sizes = [2, 12], strides = [1, 1]} : vector<2x16xf32> to vector<2x12xf32>
    %367 = arith.negf %366 : vector<2x12xf32>
    %368 = math.exp %367 : vector<2x12xf32>
    %cst_70 = arith.constant 1.000000e+00 : f32
    %369 = vector.broadcast %cst_70 : f32 to vector<2x12xf32>
    %370 = arith.addf %369, %368 : vector<2x12xf32>
    %371 = arith.divf %369, %370 : vector<2x12xf32>
    %372 = vector.extract_strided_slice %365 {offsets = [0, 12], sizes = [2, 4], strides = [1, 1]} : vector<2x16xf32> to vector<2x4xf32>
    %373 = math.tanh %372 : vector<2x4xf32>
    %374 = vector.extract_strided_slice %371 {offsets = [0, 4], sizes = [2, 4], strides = [1, 1]} : vector<2x12xf32> to vector<2x4xf32>
    %375 = arith.mulf %374, %337 : vector<2x4xf32>
    %376 = vector.extract_strided_slice %371 {offsets = [0, 0], sizes = [2, 4], strides = [1, 1]} : vector<2x12xf32> to vector<2x4xf32>
    %377 = arith.mulf %376, %373 : vector<2x4xf32>
    %378 = arith.addf %375, %377 : vector<2x4xf32>
    %379 = vector.extract_strided_slice %371 {offsets = [0, 8], sizes = [2, 4], strides = [1, 1]} : vector<2x12xf32> to vector<2x4xf32>
    %380 = math.tanh %378 : vector<2x4xf32>
    %381 = arith.mulf %379, %380 : vector<2x4xf32>
    %c0_71 = arith.constant 0 : index
    %c32 = arith.constant 32 : index
    %382 = vector.load %arg7[%c0_71, %c32] : memref<2x48xf32, #tpu.memory_space<vmem>>, vector<2x4xf32>
    tpu.vector_store %arg7[%c0_71, %c32], %381 {strides = array<i32>} : memref<2x48xf32, #tpu.memory_space<vmem>>, vector<2x4xf32>,
    %383 = vector.extract_strided_slice %5 {offsets = [18, 0], sizes = [2, 128], strides = [1, 1]} : vector<24x128xf32> to vector<2x128xf32>
    %cst_72 = arith.constant dense<0.000000e+00> : vector<2x128xf32>
    %384 = tpu.matmul %360, %6, %cst_72 {dimension_numbers = #tpu.dot_dimension_numbers<[1], [0], [0], [1], [0, 0, 1, 1], [], []>} : vector<2x32xf32>, vector<32x128xf32>, vector<2x128xf32> -> vector<2x128xf32>
    %385 = arith.addf %383, %384 : vector<2x128xf32>
    %386 = vector.extract_strided_slice %385 {offsets = [0, 0], sizes = [2, 96], strides = [1, 1]} : vector<2x128xf32> to vector<2x96xf32>
    %387 = arith.negf %386 : vector<2x96xf32>
    %388 = math.exp %387 : vector<2x96xf32>
    %cst_73 = arith.constant 1.000000e+00 : f32
    %389 = vector.broadcast %cst_73 : f32 to vector<2x96xf32>
    %390 = arith.addf %389, %388 : vector<2x96xf32>
    %391 = arith.divf %389, %390 : vector<2x96xf32>
    %392 = vector.extract_strided_slice %385 {offsets = [0, 96], sizes = [2, 32], strides = [1, 1]} : vector<2x128xf32> to vector<2x32xf32>
    %393 = math.tanh %392 : vector<2x32xf32>
    %394 = vector.extract_strided_slice %391 {offsets = [0, 32], sizes = [2, 32], strides = [1, 1]} : vector<2x96xf32> to vector<2x32xf32>
    %395 = arith.mulf %394, %357 : vector<2x32xf32>
    %396 = vector.extract_strided_slice %391 {offsets = [0, 0], sizes = [2, 32], strides = [1, 1]} : vector<2x96xf32> to vector<2x32xf32>
    %397 = arith.mulf %396, %393 : vector<2x32xf32>
    %398 = arith.addf %395, %397 : vector<2x32xf32>
    %399 = vector.extract_strided_slice %391 {offsets = [0, 64], sizes = [2, 32], strides = [1, 1]} : vector<2x96xf32> to vector<2x32xf32>
    %400 = math.tanh %398 : vector<2x32xf32>
    %401 = arith.mulf %399, %400 : vector<2x32xf32>
    %cst_74 = arith.constant dense<0.000000e+00> : vector<2x16xf32>
    %402 = tpu.matmul %401, %7, %cst_74 {dimension_numbers = #tpu.dot_dimension_numbers<[1], [0], [0], [1], [0, 0, 1, 1], [], []>} : vector<2x32xf32>, vector<32x16xf32>, vector<2x16xf32> -> vector<2x16xf32>
    %cst_75 = arith.constant dense<0.000000e+00> : vector<2x16xf32>
    %403 = tpu.matmul %381, %8, %cst_75 {dimension_numbers = #tpu.dot_dimension_numbers<[1], [0], [0], [1], [0, 0, 1, 1], [], []>} : vector<2x4xf32>, vector<4x16xf32>, vector<2x16xf32> -> vector<2x16xf32>
    %404 = arith.addf %402, %403 : vector<2x16xf32>
    %405 = vector.broadcast %9 : vector<1x16xf32> to vector<2x16xf32>
    %406 = arith.addf %404, %405 : vector<2x16xf32>
    %407 = vector.extract_strided_slice %406 {offsets = [0, 0], sizes = [2, 12], strides = [1, 1]} : vector<2x16xf32> to vector<2x12xf32>
    %408 = arith.negf %407 : vector<2x12xf32>
    %409 = math.exp %408 : vector<2x12xf32>
    %cst_76 = arith.constant 1.000000e+00 : f32
    %410 = vector.broadcast %cst_76 : f32 to vector<2x12xf32>
    %411 = arith.addf %410, %409 : vector<2x12xf32>
    %412 = arith.divf %410, %411 : vector<2x12xf32>
    %413 = vector.extract_strided_slice %406 {offsets = [0, 12], sizes = [2, 4], strides = [1, 1]} : vector<2x16xf32> to vector<2x4xf32>
    %414 = math.tanh %413 : vector<2x4xf32>
    %415 = vector.extract_strided_slice %412 {offsets = [0, 4], sizes = [2, 4], strides = [1, 1]} : vector<2x12xf32> to vector<2x4xf32>
    %416 = arith.mulf %415, %378 : vector<2x4xf32>
    %417 = vector.extract_strided_slice %412 {offsets = [0, 0], sizes = [2, 4], strides = [1, 1]} : vector<2x12xf32> to vector<2x4xf32>
    %418 = arith.mulf %417, %414 : vector<2x4xf32>
    %419 = arith.addf %416, %418 : vector<2x4xf32>
    %420 = vector.extract_strided_slice %412 {offsets = [0, 8], sizes = [2, 4], strides = [1, 1]} : vector<2x12xf32> to vector<2x4xf32>
    %421 = math.tanh %419 : vector<2x4xf32>
    %422 = arith.mulf %420, %421 : vector<2x4xf32>
    %c0_77 = arith.constant 0 : index
    %c36 = arith.constant 36 : index
    %423 = vector.load %arg7[%c0_77, %c36] : memref<2x48xf32, #tpu.memory_space<vmem>>, vector<2x4xf32>
    tpu.vector_store %arg7[%c0_77, %c36], %422 {strides = array<i32>} : memref<2x48xf32, #tpu.memory_space<vmem>>, vector<2x4xf32>,
    %424 = vector.extract_strided_slice %5 {offsets = [20, 0], sizes = [2, 128], strides = [1, 1]} : vector<24x128xf32> to vector<2x128xf32>
    %cst_78 = arith.constant dense<0.000000e+00> : vector<2x128xf32>
    %425 = tpu.matmul %401, %6, %cst_78 {dimension_numbers = #tpu.dot_dimension_numbers<[1], [0], [0], [1], [0, 0, 1, 1], [], []>} : vector<2x32xf32>, vector<32x128xf32>, vector<2x128xf32> -> vector<2x128xf32>
    %426 = arith.addf %424, %425 : vector<2x128xf32>
    %427 = vector.extract_strided_slice %426 {offsets = [0, 0], sizes = [2, 96], strides = [1, 1]} : vector<2x128xf32> to vector<2x96xf32>
    %428 = arith.negf %427 : vector<2x96xf32>
    %429 = math.exp %428 : vector<2x96xf32>
    %cst_79 = arith.constant 1.000000e+00 : f32
    %430 = vector.broadcast %cst_79 : f32 to vector<2x96xf32>
    %431 = arith.addf %430, %429 : vector<2x96xf32>
    %432 = arith.divf %430, %431 : vector<2x96xf32>
    %433 = vector.extract_strided_slice %426 {offsets = [0, 96], sizes = [2, 32], strides = [1, 1]} : vector<2x128xf32> to vector<2x32xf32>
    %434 = math.tanh %433 : vector<2x32xf32>
    %435 = vector.extract_strided_slice %432 {offsets = [0, 32], sizes = [2, 32], strides = [1, 1]} : vector<2x96xf32> to vector<2x32xf32>
    %436 = arith.mulf %435, %398 : vector<2x32xf32>
    %437 = vector.extract_strided_slice %432 {offsets = [0, 0], sizes = [2, 32], strides = [1, 1]} : vector<2x96xf32> to vector<2x32xf32>
    %438 = arith.mulf %437, %434 : vector<2x32xf32>
    %439 = arith.addf %436, %438 : vector<2x32xf32>
    %440 = vector.extract_strided_slice %432 {offsets = [0, 64], sizes = [2, 32], strides = [1, 1]} : vector<2x96xf32> to vector<2x32xf32>
    %441 = math.tanh %439 : vector<2x32xf32>
    %442 = arith.mulf %440, %441 : vector<2x32xf32>
    %cst_80 = arith.constant dense<0.000000e+00> : vector<2x16xf32>
    %443 = tpu.matmul %442, %7, %cst_80 {dimension_numbers = #tpu.dot_dimension_numbers<[1], [0], [0], [1], [0, 0, 1, 1], [], []>} : vector<2x32xf32>, vector<32x16xf32>, vector<2x16xf32> -> vector<2x16xf32>
    %cst_81 = arith.constant dense<0.000000e+00> : vector<2x16xf32>
    %444 = tpu.matmul %422, %8, %cst_81 {dimension_numbers = #tpu.dot_dimension_numbers<[1], [0], [0], [1], [0, 0, 1, 1], [], []>} : vector<2x4xf32>, vector<4x16xf32>, vector<2x16xf32> -> vector<2x16xf32>
    %445 = arith.addf %443, %444 : vector<2x16xf32>
    %446 = vector.broadcast %9 : vector<1x16xf32> to vector<2x16xf32>
    %447 = arith.addf %445, %446 : vector<2x16xf32>
    %448 = vector.extract_strided_slice %447 {offsets = [0, 0], sizes = [2, 12], strides = [1, 1]} : vector<2x16xf32> to vector<2x12xf32>
    %449 = arith.negf %448 : vector<2x12xf32>
    %450 = math.exp %449 : vector<2x12xf32>
    %cst_82 = arith.constant 1.000000e+00 : f32
    %451 = vector.broadcast %cst_82 : f32 to vector<2x12xf32>
    %452 = arith.addf %451, %450 : vector<2x12xf32>
    %453 = arith.divf %451, %452 : vector<2x12xf32>
    %454 = vector.extract_strided_slice %447 {offsets = [0, 12], sizes = [2, 4], strides = [1, 1]} : vector<2x16xf32> to vector<2x4xf32>
    %455 = math.tanh %454 : vector<2x4xf32>
    %456 = vector.extract_strided_slice %453 {offsets = [0, 4], sizes = [2, 4], strides = [1, 1]} : vector<2x12xf32> to vector<2x4xf32>
    %457 = arith.mulf %456, %419 : vector<2x4xf32>
    %458 = vector.extract_strided_slice %453 {offsets = [0, 0], sizes = [2, 4], strides = [1, 1]} : vector<2x12xf32> to vector<2x4xf32>
    %459 = arith.mulf %458, %455 : vector<2x4xf32>
    %460 = arith.addf %457, %459 : vector<2x4xf32>
    %461 = vector.extract_strided_slice %453 {offsets = [0, 8], sizes = [2, 4], strides = [1, 1]} : vector<2x12xf32> to vector<2x4xf32>
    %462 = math.tanh %460 : vector<2x4xf32>
    %463 = arith.mulf %461, %462 : vector<2x4xf32>
    %c0_83 = arith.constant 0 : index
    %c40 = arith.constant 40 : index
    %464 = vector.load %arg7[%c0_83, %c40] : memref<2x48xf32, #tpu.memory_space<vmem>>, vector<2x4xf32>
    tpu.vector_store %arg7[%c0_83, %c40], %463 {strides = array<i32>} : memref<2x48xf32, #tpu.memory_space<vmem>>, vector<2x4xf32>,
    %465 = vector.extract_strided_slice %5 {offsets = [22, 0], sizes = [2, 128], strides = [1, 1]} : vector<24x128xf32> to vector<2x128xf32>
    %cst_84 = arith.constant dense<0.000000e+00> : vector<2x128xf32>
    %466 = tpu.matmul %442, %6, %cst_84 {dimension_numbers = #tpu.dot_dimension_numbers<[1], [0], [0], [1], [0, 0, 1, 1], [], []>} : vector<2x32xf32>, vector<32x128xf32>, vector<2x128xf32> -> vector<2x128xf32>
    %467 = arith.addf %465, %466 : vector<2x128xf32>
    %468 = vector.extract_strided_slice %467 {offsets = [0, 0], sizes = [2, 96], strides = [1, 1]} : vector<2x128xf32> to vector<2x96xf32>
    %469 = arith.negf %468 : vector<2x96xf32>
    %470 = math.exp %469 : vector<2x96xf32>
    %cst_85 = arith.constant 1.000000e+00 : f32
    %471 = vector.broadcast %cst_85 : f32 to vector<2x96xf32>
    %472 = arith.addf %471, %470 : vector<2x96xf32>
    %473 = arith.divf %471, %472 : vector<2x96xf32>
    %474 = vector.extract_strided_slice %467 {offsets = [0, 96], sizes = [2, 32], strides = [1, 1]} : vector<2x128xf32> to vector<2x32xf32>
    %475 = math.tanh %474 : vector<2x32xf32>
    %476 = vector.extract_strided_slice %473 {offsets = [0, 32], sizes = [2, 32], strides = [1, 1]} : vector<2x96xf32> to vector<2x32xf32>
    %477 = arith.mulf %476, %439 : vector<2x32xf32>
    %478 = vector.extract_strided_slice %473 {offsets = [0, 0], sizes = [2, 32], strides = [1, 1]} : vector<2x96xf32> to vector<2x32xf32>
    %479 = arith.mulf %478, %475 : vector<2x32xf32>
    %480 = arith.addf %477, %479 : vector<2x32xf32>
    %481 = vector.extract_strided_slice %473 {offsets = [0, 64], sizes = [2, 32], strides = [1, 1]} : vector<2x96xf32> to vector<2x32xf32>
    %482 = math.tanh %480 : vector<2x32xf32>
    %483 = arith.mulf %481, %482 : vector<2x32xf32>
    %cst_86 = arith.constant dense<0.000000e+00> : vector<2x16xf32>
    %484 = tpu.matmul %483, %7, %cst_86 {dimension_numbers = #tpu.dot_dimension_numbers<[1], [0], [0], [1], [0, 0, 1, 1], [], []>} : vector<2x32xf32>, vector<32x16xf32>, vector<2x16xf32> -> vector<2x16xf32>
    %cst_87 = arith.constant dense<0.000000e+00> : vector<2x16xf32>
    %485 = tpu.matmul %463, %8, %cst_87 {dimension_numbers = #tpu.dot_dimension_numbers<[1], [0], [0], [1], [0, 0, 1, 1], [], []>} : vector<2x4xf32>, vector<4x16xf32>, vector<2x16xf32> -> vector<2x16xf32>
    %486 = arith.addf %484, %485 : vector<2x16xf32>
    %487 = vector.broadcast %9 : vector<1x16xf32> to vector<2x16xf32>
    %488 = arith.addf %486, %487 : vector<2x16xf32>
    %489 = vector.extract_strided_slice %488 {offsets = [0, 0], sizes = [2, 12], strides = [1, 1]} : vector<2x16xf32> to vector<2x12xf32>
    %490 = arith.negf %489 : vector<2x12xf32>
    %491 = math.exp %490 : vector<2x12xf32>
    %cst_88 = arith.constant 1.000000e+00 : f32
    %492 = vector.broadcast %cst_88 : f32 to vector<2x12xf32>
    %493 = arith.addf %492, %491 : vector<2x12xf32>
    %494 = arith.divf %492, %493 : vector<2x12xf32>
    %495 = vector.extract_strided_slice %488 {offsets = [0, 12], sizes = [2, 4], strides = [1, 1]} : vector<2x16xf32> to vector<2x4xf32>
    %496 = math.tanh %495 : vector<2x4xf32>
    %497 = vector.extract_strided_slice %494 {offsets = [0, 4], sizes = [2, 4], strides = [1, 1]} : vector<2x12xf32> to vector<2x4xf32>
    %498 = arith.mulf %497, %460 : vector<2x4xf32>
    %499 = vector.extract_strided_slice %494 {offsets = [0, 0], sizes = [2, 4], strides = [1, 1]} : vector<2x12xf32> to vector<2x4xf32>
    %500 = arith.mulf %499, %496 : vector<2x4xf32>
    %501 = arith.addf %498, %500 : vector<2x4xf32>
    %502 = vector.extract_strided_slice %494 {offsets = [0, 8], sizes = [2, 4], strides = [1, 1]} : vector<2x12xf32> to vector<2x4xf32>
    %503 = math.tanh %501 : vector<2x4xf32>
    %504 = arith.mulf %502, %503 : vector<2x4xf32>
    %c0_89 = arith.constant 0 : index
    %c44 = arith.constant 44 : index
    %505 = vector.load %arg7[%c0_89, %c44] : memref<2x48xf32, #tpu.memory_space<vmem>>, vector<2x4xf32>
    tpu.vector_store %arg7[%c0_89, %c44], %504 {strides = array<i32>} : memref<2x48xf32, #tpu.memory_space<vmem>>, vector<2x4xf32>,
    return
  }
}

</mosaic_0001>

<bundles_post_ra>
// kernel: mann_forward.1
= control target key start
LH: loop header
LB: loop body
LE: loop exit
PB: predicated region body
PF: predicated region fallthrough
CT: control target
= control target key end

     0   :  { %vm52_vm0 = vcmask 1043456   ;;  %v2274_v11 = vmov 0.0   ;;  %vm42_vm1 = vcmask 556032   ;;  %s2276_s18 = smov 64   ;;  %vm92_vm6 = vcmask 261120   ;;  %s2277_s21 = smov 116   ;;  %s2926_s1 = inlined_call_operand.vmem [shape: f32[68,128], index: 1, kind: input, shape index: {}]   ;;  %s2927_s2 = inlined_call_operand.vmem [shape: f32[32,128], index: 2, kind: input, shape index: {}]   ;;  %s2928_s3 = inlined_call_operand.vmem [shape: f32[1,128], index: 3, kind: input, shape index: {}]   ;;  %s2929_s0 = inlined_call_operand.vmem [shape: f32[24,68], index: 0, kind: input, shape index: {}]   ;;  %s2930_s5 = inlined_call_operand.vmem [shape: f32[4,16], index: 5, kind: input, shape index: {}]   ;;  %s2931_s4 = inlined_call_operand.vmem [shape: f32[32,16], index: 4, kind: input, shape index: {}]   ;;  %s2932_s6 = inlined_call_operand.vmem [shape: f32[1,16], index: 6, kind: input, shape index: {}]   ;;  %s2933_s7 = inlined_call_operand.vmem [shape: f32[2,48], index: 7, kind: output, shape index: {}]  }
   0x1   :  { %v37_v0 = vld [vmem:[%s2926_s1 + $0x40] sm:$0xf]  ;;  %v36_v1 = vld [vmem:[%s2926_s1 + $0x38] sm:$0xff]  ;;  %v35_v2 = vld [vmem:[%s2926_s1 + $0x30] sm:$0xff]  ;;  %s2278_s22 = smov 4   ;;  %s2279_s23 = smov 120  }
   0x2   :  { %1981 = vmatpush.msk.msra.mxu0 %vm52_vm0, %v37_v0  ;;  %v2341_v3 = vld [vmem:[%s2927_s2 + $0x18] sm:$0xff]  ;;  %v2347_v4 = vld [vmem:[%s2927_s2 + $0x10] sm:$0xff]  ;;  %v34_v5 = vld [vmem:[%s2926_s1 + $0x28] sm:$0xff]  ;;  %vm250_vm15 = vcmask 25600   ;;  %s2283_s30 = smov 16   ;;  %s2284_s8 = smov 28  }
   0x3   :  { %108 = vmatpush.msra.mxu1 %v2341_v3  ;;  %v2355_v6 = vld [vmem:[%s2927_s2 + $0x8] sm:$0xff]  ;;  %v33_v7 = vld [vmem:[%s2926_s1 + $0x20] sm:$0xff]  ;;  %v32_v9 = vld [vmem:[%s2926_s1 + $0x18] sm:$0xff]  ;;  %s2285_s11 = smov 8   ;;  %s2286_s12 = smov 20  }
   0x4   :  { %64 = vmatpush.msra.mxu0 %v36_v1  ;;  %v2364_v8 = vld [vmem:[%s2927_s2] sm:$0xff]  ;;  %v31_v10 = vld [vmem:[%s2926_s1 + $0x10] sm:$0xff]  ;;  %v30_v12 = vld [vmem:[%s2926_s1 + $0x8] sm:$0xff]  ;;  %s2287_s13 = smov 36  }
   0x5   :  { %109 = vmatpush.msra.mxu1 %v2347_v4  ;;  %v29_v13 = vld [vmem:[%s2926_s1] sm:$0xff]  ;;  %s2275_s1 = smov 32   ;;  %v2411_v41 = vld [vmem:[%s2931_s4 + $0x18] sm:$0xff]  ;;  %v2416_v42 = vld [vmem:[%s2931_s4 + $0x10] sm:$0xff] }
   0x6   :  { %65 = vmatpush.msra.mxu0 %v35_v2  ;;  %v26_v14 = vld [vmem:[%s2929_s0] sm:$0xff]  ;;  %197 = vmatpush.msra.mxu3 %v2411_v41  ;;  %v2424_v43 = vld [vmem:[%s2931_s4 + $0x8] sm:$0xff] }
   0x7   :  { %110 = vmatpush.msra.mxu1 %v2355_v6  ;;  %v2391_v15 = vld [vmem:[%s2928_s3] ss:$0 sm:$0xff] }
   0x8   :  { %66 = vmatpush.msra.mxu0 %v34_v5  ;;  %v2406_v40 = vld [vmem:[%s2930_s5] sm:$0xf]  ;;  %198 = vmatpush.msra.mxu3 %v2416_v42 }
   0x9   :  { %111 = vmatpush.msra.mxu1 %v2364_v8  ;;  %1986 = vmatpush.msk.msra.mxu2 %vm52_vm0, %v2406_v40  ;;  %v2433_v44 = vld [vmem:[%s2931_s4] sm:$0xff] }
   0xa   :  { %67 = vmatpush.msra.mxu0 %v33_v7  ;;  %112 = vmatmul.f32.vlgmr.msra.gmra.mxu1 %v2274_v11  ;;  %v2467_v54 = vld [vmem:[%s2932_s6] ss:$0 sm:$0xff] }
   0xb   :  { %176 = vmatmul.f32.vlgmr.msra.gmra.mxu2 %v2274_v11  ;;  %1991 = vmatpush.msk.msrb.mxu1 %vm52_vm0, %v2406_v40 }
   0xc   :  { %68 = vmatpush.msra.mxu0 %v32_v9  ;;  %264 = vmatpush.msrb.mxu2 %v2341_v3 }
   0xd   :  { %1997 = vmatpush.msk.msra.mxu1 %vm52_vm0, %v2406_v40  ;;  %199 = vmatpush.msra.mxu3 %v2424_v43 }
   0xe   :  { %69 = vmatpush.msra.mxu0 %v31_v10  ;;  %265 = vmatpush.msrb.mxu2 %v2347_v4 }
   0xf   :  { %200 = vmatpush.msra.mxu3 %v2433_v44 }
  0x10   :  { %70 = vmatpush.msra.mxu0 %v30_v12  ;;  %266 = vmatpush.msrb.mxu2 %v2355_v6 }
  0x11   :  { %356 = vmatpush.msrb.mxu3 %v2411_v41 }
  0x12   :  { %71 = vmatpush.msra.mxu0 %v29_v13  ;;  %267 = vmatpush.msrb.mxu2 %v2364_v8 }
  0x13   :  { %1982 = vmatmul.msk.f32.vlgmr.msra.gmra.mxu0 %vm42_vm1, %v26_v14  ;;  %357 = vmatpush.msrb.mxu3 %v2416_v42 }
  0x14   :  { %887 = vmatpush.msrb.mxu0 %v2341_v3  ;;  %420 = vmatpush.msra.mxu2 %v2341_v3 }
  0x15   :  { %358 = vmatpush.msrb.mxu3 %v2424_v43 }
  0x16   :  { %888 = vmatpush.msrb.mxu0 %v2347_v4  ;;  %421 = vmatpush.msra.mxu2 %v2347_v4 }
  0x17   :  { %359 = vmatpush.msrb.mxu3 %v2433_v44 }
  0x18   :  { %889 = vmatpush.msrb.mxu0 %v2355_v6  ;;  %422 = vmatpush.msra.mxu2 %v2355_v6 }
  0x1a   :  { %890 = vmatpush.msrb.mxu0 %v2364_v8  ;;  %423 = vmatpush.msra.mxu2 %v2364_v8 }
  0x1c   :  { %2021 = vmatpush.msk.msra.mxu0 %vm52_vm0, %v2406_v40 }
  0x87   :  { %v113_v17 = vpop.f32.mrf.mxu1 }
  0x8e   :  { %v177_v48 = vpop.f32.mrf.mxu2 }
  0x90   :  { %v73_v16 = vpop.f32.mrf.mxu0 }
  0x91   :  { %v2394_v18 = vadd.f32 %v2391_v15, %v73_v16 }
  0x93   :  { %v116_v19 = vadd.f32 %v113_v17, %v2394_v18 }
  0x95   :  { %2071 = vtanh.f32 %v116_v19  ;;  %v1985_v21 = vmul.f32 -1.442695, %v116_v19 }
  0x97   :  { %2073 = vpow2.f32 %v1985_v21 }
  0x9b   :  { %v2072_v20 = vpop.eup %2071 }
  0x9c   :  { %139 = vrot.lane.b32.xlu0 %v2072_v20, %s2275_s1 }
  0x9d   :  { %v2074_v22 = vpop.eup %2073 }
  0x9e   :  { %v120_v23 = vadd.f32 1.0, %v2074_v22 }
  0xa0   :  { %2075 = vrcp.f32 %v120_v23  ;;  %v132_v29 = vand.u32 2147483648, %v120_v23  ;;  %vm126_vm3 = vweird.f32 %v120_v23  ;;  %v130_v30 = vand.u32 2147483647, %v120_v23 }
  0xa2   :  { %v133_v32 = vor.u32 1.1754944e-38, %v132_v29  ;;  %vm131_vm5 = vcmp.eq.f32.partialorder %v130_v30, 8.507059e+37 }
  0xa6   :  { %v2076_v24 = vpop.eup %2075 }
  0xa7   :  { %v122_v25 = vmul.f32 %v2076_v24, %v120_v23  ;;  %vm127_vm2 = vweird.f32 %v2076_v24 }
  0xa8   :  { %vm128_vm4 = vmor %vm126_vm3, %vm127_vm2  ;;  %vm154_vm2 = vcmask 31744  }
  0xa9   :  { %v123_v26 = vsub.f32 1.0, %v122_v25 }
  0xab   :  { %v124_v27 = vmul.f32 %v2076_v24, %v123_v26 }
  0xad   :  { %v125_v28 = vadd.f32 %v2076_v24, %v124_v27 }
  0xaf   :  { %v129_v31 = vsel %vm128_vm4, %v2076_v24, %v125_v28 }
  0xb0   :  { %v134_v34 = vsel %vm131_vm5, %v133_v32, %v129_v31 }
  0xb1   :  { %v137_v36 = vmul.f32 0.0, %v134_v34 }
 0x10e   :  { %v140_v33 = vpop.permute.xlu0 %139 }
 0x10f   :  { %v142_v35 = vmul.f32 %v140_v33, %v134_v34 }
 0x111   :  { %144 = vrot.lane.b32.xlu0 %v142_v35, %s2275_s1 }
 0x183   :  { %v145_v37 = vpop.permute.xlu0 %144 }
 0x184   :  { %v2399_v38 = vadd.f32 %v145_v37, %v137_v36 }
 0x186   :  { %2077 = vtanh.f32 %v2399_v38  ;;  %v297_v30 = vrot.slane %v2399_v38, 6 }
 0x18c   :  { %v2078_v39 = vpop.eup %2077 }
 0x18d   :  { %150 = vrot.lane.b32.xlu1 %v2078_v39, %s2275_s1 }
 0x1ff   :  { %v151_v45 = vpop.permute.xlu1 %150 }
 0x200   :  { %v153_v46 = vmul.f32 %v151_v45, %v134_v34 }
 0x202   :  { %181 = vrot.lane.b32.xlu1 %v153_v46, %s2276_s18 }
 0x274   :  { %v182_v47 = vpop.permute.xlu1 %181 }
 0x275   :  { %1987 = vmatmul.msk.f32.vlgmr.msra.gmra.mxu3 %vm92_vm6, %v182_v47  ;;  %1989 = vmatmul.msk.f32.vlgmr.msrb.gmra.mxu2 %vm92_vm6, %v182_v47 }
 0x276   :  { %574 = vmatpush.msrb.mxu2 %v2341_v3  ;;  %514 = vmatpush.msra.mxu3 %v2411_v41 }
 0x278   :  { %575 = vmatpush.msrb.mxu2 %v2347_v4  ;;  %515 = vmatpush.msra.mxu3 %v2416_v42 }
 0x27a   :  { %576 = vmatpush.msrb.mxu2 %v2355_v6  ;;  %516 = vmatpush.msra.mxu3 %v2424_v43 }
 0x27c   :  { %577 = vmatpush.msrb.mxu2 %v2364_v8  ;;  %517 = vmatpush.msra.mxu3 %v2433_v44 }
 0x2f8   :  { %v269_v49 = vpop.f32.mrf.mxu2  ;;  %v202_v51 = vpop.f32.mrf.mxu3 }
 0x2f9   :  { %v273_v50 = vrot.slane %v269_v49, 6  ;;  %v203_v53 = vadd.f32 %v202_v51, %v177_v48 }
 0x2fb   :  { %v275_v52 = vadd.f32 %v273_v50, %v2394_v18  ;;  %v208_v55 = vadd.f32 %v2467_v54, %v203_v53 }
 0x2fd   :  { %2079 = vtanh.f32 %v275_v52  ;;  %v1990_v58 = vmul.f32 -1.442695, %v275_v52  ;;  %v1988_v59 = vmul.f32 -1.442695, %v208_v55 }
 0x2fe   :  { %2081 = vtanh.f32 %v208_v55 }
 0x2ff   :  { %2083 = vpow2.f32 %v1990_v58 }
 0x300   :  { %2085 = vpow2.f32 %v1988_v59 }
 0x303   :  { %v2080_v56 = vpop.eup %2079 }
 0x304   :  { %301 = vrot.lane.b32.xlu2 %v2080_v56, %s2275_s1  ;;  %v2082_v57 = vpop.eup %2081 }
 0x305   :  { %v2084_v60 = vpop.eup %2083 }
 0x306   :  { %v279_v61 = vadd.f32 1.0, %v2084_v60  ;;  %v2086_v62 = vpop.eup %2085 }
 0x307   :  { %v212_v63 = vadd.f32 1.0, %v2086_v62 }
 0x308   :  { %2087 = vrcp.f32 %v279_v61  ;;  %v291_v12 = vand.u32 2147483648, %v279_v61  ;;  %vm285_vm8 = vweird.f32 %v279_v61  ;;  %v289_v13 = vand.u32 2147483647, %v279_v61 }
 0x309   :  { %2089 = vrcp.f32 %v212_v63  ;;  %v224_v23 = vand.u32 2147483648, %v212_v63  ;;  %vm218_vm12 = vweird.f32 %v212_v63  ;;  %v222_v24 = vand.u32 2147483647, %v212_v63 }
 0x30a   :  { %v292_v17 = vor.u32 1.1754944e-38, %v291_v12  ;;  %vm290_vm10 = vcmp.eq.f32.partialorder %v289_v13, 8.507059e+37 }
 0x30b   :  { %v225_v26 = vor.u32 1.1754944e-38, %v224_v23  ;;  %vm223_vm14 = vcmp.eq.f32.partialorder %v222_v24, 8.507059e+37 }
 0x30c   :  { %231 = vrot.lane.b32.xlu2 %v2082_v57, %s2277_s21 }
 0x30e   :  { %v2088_v0 = vpop.eup %2087 }
 0x30f   :  { %v281_v1 = vmul.f32 %v2088_v0, %v279_v61  ;;  %v2090_v5 = vpop.eup %2089  ;;  %vm286_vm7 = vweird.f32 %v2088_v0 }
 0x310   :  { %v214_v9 = vmul.f32 %v2090_v5, %v212_v63  ;;  %vm287_vm9 = vmor %vm285_vm8, %vm286_vm7  ;;  %vm219_vm11 = vweird.f32 %v2090_v5 }
 0x311   :  { %v282_v2 = vsub.f32 1.0, %v281_v1  ;;  %vm220_vm13 = vmor %vm218_vm12, %vm219_vm11 }
 0x312   :  { %v215_v11 = vsub.f32 1.0, %v214_v9 }
 0x313   :  { %v283_v7 = vmul.f32 %v2088_v0, %v282_v2 }
 0x314   :  { %v216_v16 = vmul.f32 %v2090_v5, %v215_v11 }
 0x315   :  { %v284_v10 = vadd.f32 %v2088_v0, %v283_v7 }
 0x316   :  { %v217_v22 = vadd.f32 %v2090_v5, %v216_v16 }
 0x317   :  { %v288_v14 = vsel %vm287_vm9, %v2088_v0, %v284_v10 }
 0x318   :  { %v293_v20 = vsel %vm290_vm10, %v292_v17, %v288_v14  ;;  %v221_v25 = vsel %vm220_vm13, %v2090_v5, %v217_v22 }
 0x319   :  { %v226_v28 = vsel %vm223_vm14, %v225_v26, %v221_v25  ;;  %v299_v31 = vmul.f32 %v297_v30, %v293_v20 }
 0x31a   :  { %v229_v34 = vmul.f32 0.0, %v226_v28 }
 0x35e   :  { %v302_v19 = vpop.permute.xlu2 %301 }
 0x35f   :  { %v304_v21 = vmul.f32 %v302_v19, %v293_v20 }
 0x361   :  { %306 = vrot.lane.b32.xlu0 %v304_v21, %s2275_s1 }
 0x366   :  { %v232_v27 = vpop.permute.xlu2 %231 }
 0x367   :  { %v234_v29 = vmul.f32 %v232_v27, %v226_v28 }
 0x369   :  { %236 = vrot.lane.b32.xlu1 %v234_v29, %s2278_s22 }
 0x3d3   :  { %v307_v32 = vpop.permute.xlu0 %306 }
 0x3d4   :  { %v2475_v33 = vadd.f32 %v307_v32, %v299_v31 }
 0x3d6   :  { %2091 = vtanh.f32 %v2475_v33 }
 0x3db   :  { %v237_v35 = vpop.permute.xlu1 %236 }
 0x3dc   :  { %v2092_v36 = vpop.eup %2091  ;;  %v2478_v37 = vadd.f32 %v237_v35, %v229_v34  ;;  %v453_v34 = vrot.slane %v2475_v33, 6 }
 0x3dd   :  { %312 = vrot.lane.b32.xlu2 %v2092_v36, %s2275_s1 }
 0x3de   :  { %2093 = vtanh.f32 %v2478_v37 }
 0x3e4   :  { %v2094_v39 = vpop.eup %2093 }
 0x3e5   :  { %242 = vrot.lane.b32.xlu0 %v2094_v39, %s2278_s22 }
 0x437   :  { %v313_v45 = vpop.permute.xlu2 %312 }
 0x438   :  { %v315_v38 = vmul.f32 %v313_v45, %v293_v20 }
 0x43a   :  { %v339_v46 = vrot.slane %v315_v38, 2 }
 0x43c   :  { %340 = vrot.lane.b32.xlu1 %v339_v46, %s2276_s18 }
 0x457   :  { %v243_v47 = vpop.permute.xlu0 %242 }
 0x458   :  { %v245_v48 = vmul.f32 %v243_v47, %v226_v28 }
 0x45a   :  { %247 = vrot.lane.b32.xlu2 %v245_v48, %s2279_s23 }
 0x4ae   :  { %v341_v49 = vpop.permute.xlu1 %340 }
 0x4af   :  { %1993 = vmatmul.msk.f32.vlgmr.msrb.gmra.mxu3 %vm92_vm6, %v341_v49  ;;  %1995 = vmatmul.msk.f32.vlgmr.msra.gmra.mxu2 %vm92_vm6, %v341_v49 }
 0x4b0   :  { %733 = vmatpush.msra.mxu2 %v2341_v3  ;;  %669 = vmatpush.msrb.mxu3 %v2411_v41 }
 0x4b2   :  { %734 = vmatpush.msra.mxu2 %v2347_v4  ;;  %670 = vmatpush.msrb.mxu3 %v2416_v42 }
 0x4b4   :  { %v248_v50 = vpop.permute.xlu2 %247  ;;  %735 = vmatpush.msra.mxu2 %v2355_v6  ;;  %671 = vmatpush.msrb.mxu3 %v2424_v43 }
 0x4b5   :  { %251 = vst.msk [vmem:[%s2933_s7] sm:$0x3] %vm250_vm15, %v248_v50  ;;  %1992 = vmatmul.msk.f32.vlgmr.msrb.gmra.mxu1 %vm154_vm2, %v248_v50 }
 0x4b6   :  { %736 = vmatpush.msra.mxu2 %v2364_v8  ;;  %672 = vmatpush.msrb.mxu3 %v2433_v44 }
 0x4b7   :  { %2003 = vmatpush.msk.msrb.mxu1 %vm52_vm0, %v2406_v40 }
 0x532   :  { %v335_v51 = vpop.f32.mrf.mxu1  ;;  %v361_v52 = vpop.f32.mrf.mxu3 }
 0x533   :  { %v362_v53 = vadd.f32 %v361_v52, %v335_v51  ;;  %v425_v55 = vpop.f32.mrf.mxu2 }
 0x534   :  { %v429_v56 = vrot.slane %v425_v55, 4 }
 0x535   :  { %v364_v57 = vadd.f32 %v2467_v54, %v362_v53 }
 0x536   :  { %v431_v58 = vadd.f32 %v429_v56, %v2394_v18 }
 0x537   :  { %2095 = vtanh.f32 %v364_v57  ;;  %v1994_v61 = vmul.f32 -1.442695, %v364_v57 }
 0x538   :  { %2097 = vtanh.f32 %v431_v58  ;;  %v1996_v62 = vmul.f32 -1.442695, %v431_v58 }
 0x539   :  { %2099 = vpow2.f32 %v1994_v61 }
 0x53a   :  { %2101 = vpow2.f32 %v1996_v62 }
 0x53d   :  { %v2096_v59 = vpop.eup %2095 }
 0x53e   :  { %v2098_v60 = vpop.eup %2097  ;;  %387 = vrot.lane.b32.xlu1 %v2096_v59, %s2277_s21 }
 0x53f   :  { %457 = vrot.lane.b32.xlu0 %v2098_v60, %s2275_s1  ;;  %v2100_v63 = vpop.eup %2099 }
 0x540   :  { %v2102_v0 = vpop.eup %2101  ;;  %v368_v1 = vadd.f32 1.0, %v2100_v63 }
 0x541   :  { %v435_v2 = vadd.f32 1.0, %v2102_v0 }
 0x542   :  { %2103 = vrcp.f32 %v368_v1  ;;  %v380_v17 = vand.u32 2147483648, %v368_v1  ;;  %vm374_vm5 = vweird.f32 %v368_v1  ;;  %v378_v20 = vand.u32 2147483647, %v368_v1 }
 0x543   :  { %2105 = vrcp.f32 %v435_v2  ;;  %v447_v21 = vand.u32 2147483648, %v435_v2  ;;  %vm441_vm8 = vweird.f32 %v435_v2  ;;  %v445_v22 = vand.u32 2147483647, %v435_v2 }
 0x544   :  { %v381_v24 = vor.u32 1.1754944e-38, %v380_v17  ;;  %vm379_vm10 = vcmp.eq.f32.partialorder %v378_v20, 8.507059e+37 }
 0x545   :  { %v448_v26 = vor.u32 1.1754944e-38, %v447_v21  ;;  %vm446_vm11 = vcmp.eq.f32.partialorder %v445_v22, 8.507059e+37 }
 0x548   :  { %v2104_v5 = vpop.eup %2103 }
 0x549   :  { %v2106_v7 = vpop.eup %2105  ;;  %v370_v9 = vmul.f32 %v2104_v5, %v368_v1  ;;  %vm375_vm3 = vweird.f32 %v2104_v5 }
 0x54a   :  { %v437_v10 = vmul.f32 %v2106_v7, %v435_v2  ;;  %vm442_vm4 = vweird.f32 %v2106_v7  ;;  %vm376_vm7 = vmor %vm374_vm5, %vm375_vm3 }
 0x54b   :  { %v371_v11 = vsub.f32 1.0, %v370_v9  ;;  %vm443_vm9 = vmor %vm441_vm8, %vm442_vm4 }
 0x54c   :  { %v438_v12 = vsub.f32 1.0, %v437_v10 }
 0x54d   :  { %v372_v13 = vmul.f32 %v2104_v5, %v371_v11 }
 0x54e   :  { %v439_v14 = vmul.f32 %v2106_v7, %v438_v12 }
 0x54f   :  { %v373_v16 = vadd.f32 %v2104_v5, %v372_v13 }
 0x550   :  { %v440_v19 = vadd.f32 %v2106_v7, %v439_v14 }
 0x551   :  { %v377_v23 = vsel %vm376_vm7, %v2104_v5, %v373_v16 }
 0x552   :  { %v444_v25 = vsel %vm443_vm9, %v2106_v7, %v440_v19  ;;  %v382_v28 = vsel %vm379_vm10, %v381_v24, %v377_v23 }
 0x553   :  { %v449_v30 = vsel %vm446_vm11, %v448_v26, %v444_v25  ;;  %v385_v38 = vmul.f32 %v382_v28, %v2478_v37 }
 0x554   :  { %v455_v35 = vmul.f32 %v453_v34, %v449_v30 }
 0x5b0   :  { %v388_v27 = vpop.permute.xlu1 %387 }
 0x5b1   :  { %v390_v29 = vmul.f32 %v388_v27, %v382_v28  ;;  %v458_v31 = vpop.permute.xlu0 %457 }
 0x5b2   :  { %v460_v32 = vmul.f32 %v458_v31, %v449_v30 }
 0x5b3   :  { %392 = vrot.lane.b32.xlu0 %v390_v29, %s2278_s22 }
 0x5b4   :  { %462 = vrot.lane.b32.xlu2 %v460_v32, %s2275_s1 }
 0x60e   :  { %v463_v36 = vpop.permute.xlu2 %462 }
 0x60f   :  { %v2508_v39 = vadd.f32 %v463_v36, %v455_v35 }
 0x611   :  { %2107 = vtanh.f32 %v2508_v39  ;;  %v607_v36 = vrot.slane %v2508_v39, 6 }
 0x617   :  { %v2108_v45 = vpop.eup %2107 }
 0x618   :  { %468 = vrot.lane.b32.xlu1 %v2108_v45, %s2275_s1 }
 0x625   :  { %v393_v46 = vpop.permute.xlu0 %392 }
 0x626   :  { %v2513_v47 = vadd.f32 %v393_v46, %v385_v38 }
 0x628   :  { %2109 = vtanh.f32 %v2513_v47 }
 0x62e   :  { %v2110_v48 = vpop.eup %2109 }
 0x62f   :  { %398 = vrot.lane.b32.xlu2 %v2110_v48, %s2278_s22 }
 0x689   :  { %v399_v33 = vpop.permute.xlu2 %398 }
 0x68a   :  { %v469_v49 = vpop.permute.xlu1 %468  ;;  %v2517_v50 = vmul.f32 %v399_v33, %v382_v28 }
 0x68b   :  { %v471_v51 = vmul.f32 %v469_v49, %v449_v30 }
 0x68c   :  { %472 = vrot.lane.b32.xlu1 %v2517_v50, %s2279_s23 }
 0x68d   :  { %v497_v52 = vrot.slane %v471_v51, 4 }
 0x68f   :  { %498 = vrot.lane.b32.xlu0 %v497_v52, %s2276_s18 }
 0x6fe   :  { %v473_v37 = vpop.permute.xlu1 %472 }
 0x6ff   :  { %1998 = vmatmul.msk.f32.vlgmr.msra.gmra.mxu1 %vm154_vm2, %v473_v37 }
 0x700   :  { %2009 = vmatpush.msk.msra.mxu1 %vm52_vm0, %v2406_v40 }
 0x701   :  { %v499_v53 = vpop.permute.xlu0 %498 }
 0x702   :  { %1999 = vmatmul.msk.f32.vlgmr.msra.gmra.mxu3 %vm92_vm6, %v499_v53  ;;  %2001 = vmatmul.msk.f32.vlgmr.msrb.gmra.mxu2 %vm92_vm6, %v499_v53 }
 0x703   :  { %823 = vmatpush.msra.mxu3 %v2411_v41  ;;  %2015 = vmatpush.msk.msrb.mxu2 %vm52_vm0, %v2406_v40 }
 0x705   :  { %824 = vmatpush.msra.mxu3 %v2416_v42 }
 0x707   :  { %825 = vmatpush.msra.mxu3 %v2424_v43 }
 0x709   :  { %826 = vmatpush.msra.mxu3 %v2433_v44 }
 0x77c   :  { %v493_v55 = vpop.f32.mrf.mxu1 }
 0x785   :  { %v519_v56 = vpop.f32.mrf.mxu3  ;;  %v579_v57 = vpop.f32.mrf.mxu2 }
 0x786   :  { %v520_v58 = vadd.f32 %v519_v56, %v493_v55  ;;  %v583_v59 = vrot.slane %v579_v57, 2  ;;  %v27_v56 = vld [vmem:[%s2929_s0 + $0x8] sm:$0xff] }
 0x787   :  { %1983 = vmatmul.msk.f32.gmra.mxu0 %vm42_vm1, %v27_v56 }
 0x788   :  { %v522_v60 = vadd.f32 %v2467_v54, %v520_v58  ;;  %v585_v61 = vadd.f32 %v583_v59, %v2394_v18 }
 0x78a   :  { %2111 = vtanh.f32 %v522_v60  ;;  %v2002_v0 = vmul.f32 -1.442695, %v585_v61  ;;  %v2000_v7 = vmul.f32 -1.442695, %v522_v60 }
 0x78b   :  { %2113 = vtanh.f32 %v585_v61 }
 0x78c   :  { %2115 = vpow2.f32 %v2002_v0 }
 0x790   :  { %v2112_v62 = vpop.eup %2111 }
 0x791   :  { %v2114_v63 = vpop.eup %2113  ;;  %545 = vrot.lane.b32.xlu0 %v2112_v62, %s2277_s21 }
 0x792   :  { %611 = vrot.lane.b32.xlu2 %v2114_v63, %s2275_s1  ;;  %v2116_v1 = vpop.eup %2115 }
 0x793   :  { %v589_v2 = vadd.f32 1.0, %v2116_v1 }
 0x795   :  { %2117 = vrcp.f32 %v589_v2  ;;  %v601_v14 = vand.u32 2147483648, %v589_v2  ;;  %vm595_vm13 = vweird.f32 %v589_v2  ;;  %v599_v16 = vand.u32 2147483647, %v589_v2 }
 0x796   :  { %2119 = vpow2.f32 %v2000_v7 }
 0x797   :  { %v602_v19 = vor.u32 1.1754944e-38, %v601_v14  ;;  %vm600_vm15 = vcmp.eq.f32.partialorder %v599_v16, 8.507059e+37 }
 0x79b   :  { %v2118_v5 = vpop.eup %2117 }
 0x79c   :  { %v591_v9 = vmul.f32 %v2118_v5, %v589_v2  ;;  %v2120_v11 = vpop.eup %2119  ;;  %vm596_vm12 = vweird.f32 %v2118_v5 }
 0x79d   :  { %v526_v12 = vadd.f32 1.0, %v2120_v11  ;;  %vm597_vm14 = vmor %vm595_vm13, %vm596_vm12 }
 0x79e   :  { %v592_v10 = vsub.f32 1.0, %v591_v9 }
 0x79f   :  { %2121 = vrcp.f32 %v526_v12  ;;  %v538_v28 = vand.u32 2147483648, %v526_v12  ;;  %vm532_vm4 = vweird.f32 %v526_v12  ;;  %v536_v29 = vand.u32 2147483647, %v526_v12 }
 0x7a0   :  { %v593_v18 = vmul.f32 %v2118_v5, %v592_v10 }
 0x7a1   :  { %v539_v31 = vor.u32 1.1754944e-38, %v538_v28  ;;  %vm537_vm7 = vcmp.eq.f32.partialorder %v536_v29, 8.507059e+37 }
 0x7a2   :  { %v594_v13 = vadd.f32 %v2118_v5, %v593_v18 }
 0x7a4   :  { %v598_v17 = vsel %vm597_vm14, %v2118_v5, %v594_v13 }
 0x7a5   :  { %v603_v21 = vsel %vm600_vm15, %v602_v19, %v598_v17  ;;  %v2122_v22 = vpop.eup %2121 }
 0x7a6   :  { %v528_v24 = vmul.f32 %v2122_v22, %v526_v12  ;;  %vm533_vm3 = vweird.f32 %v2122_v22  ;;  %v609_v38 = vmul.f32 %v607_v36, %v603_v21 }
 0x7a7   :  { %vm534_vm5 = vmor %vm532_vm4, %vm533_vm3 }
 0x7a8   :  { %v529_v25 = vsub.f32 1.0, %v528_v24 }
 0x7aa   :  { %v530_v26 = vmul.f32 %v2122_v22, %v529_v25 }
 0x7ac   :  { %v531_v27 = vadd.f32 %v2122_v22, %v530_v26 }
 0x7ae   :  { %v535_v30 = vsel %vm534_vm5, %v2122_v22, %v531_v27 }
 0x7af   :  { %v540_v34 = vsel %vm537_vm7, %v539_v31, %v535_v30 }
 0x7b0   :  { %v543_v45 = vmul.f32 %v540_v34, %v2513_v47 }
 0x7ec   :  { %v612_v20 = vpop.permute.xlu2 %611 }
 0x7ed   :  { %v614_v23 = vmul.f32 %v612_v20, %v603_v21 }
 0x7ef   :  { %616 = vrot.lane.b32.xlu1 %v614_v23, %s2275_s1 }
 0x803   :  { %v546_v32 = vpop.permute.xlu0 %545 }
 0x804   :  { %v548_v35 = vmul.f32 %v546_v32, %v540_v34  ;;  %v76_v59 = vpop.f32.mrf.mxu0 }
 0x805   :  { %v2574_v60 = vadd.f32 %v2391_v15, %v76_v59 }
 0x806   :  { %550 = vrot.lane.b32.xlu2 %v548_v35, %s2278_s22 }
 0x860   :  { %v551_v46 = vpop.permute.xlu2 %550 }
 0x861   :  { %v617_v48 = vpop.permute.xlu1 %616  ;;  %v2541_v33 = vadd.f32 %v551_v46, %v543_v45 }
 0x862   :  { %v2543_v49 = vadd.f32 %v617_v48, %v609_v38 }
 0x863   :  { %2123 = vtanh.f32 %v2541_v33 }
 0x864   :  { %2125 = vtanh.f32 %v2543_v49 }
 0x869   :  { %v2124_v51 = vpop.eup %2123 }
 0x86a   :  { %v2126_v52 = vpop.eup %2125  ;;  %556 = vrot.lane.b32.xlu1 %v2124_v51, %s2278_s22 }
 0x86b   :  { %622 = vrot.lane.b32.xlu0 %v2126_v52, %s2275_s1 }
 0x8dc   :  { %v557_v39 = vpop.permute.xlu1 %556 }
 0x8dd   :  { %v623_v37 = vpop.permute.xlu0 %622  ;;  %v2549_v47 = vmul.f32 %v557_v39, %v540_v34  ;;  %v763_v39 = vrot.slane %v2543_v49, 6 }
 0x8de   :  { %v625_v53 = vmul.f32 %v623_v37, %v603_v21 }
 0x8df   :  { %627 = vrot.lane.b32.xlu0 %v2549_v47, %s2279_s23 }
 0x8e0   :  { %v652_v55 = vrot.slane %v625_v53, 6 }
 0x8e2   :  { %653 = vrot.lane.b32.xlu2 %v652_v55, %s2276_s18 }
 0x93c   :  { %v654_v57 = vpop.permute.xlu2 %653 }
 0x93d   :  { %2005 = vmatmul.msk.f32.vlgmr.msrb.gmra.mxu3 %vm92_vm6, %v654_v57  ;;  %2007 = vmatmul.msk.f32.vlgmr.msra.gmra.mxu2 %vm92_vm6, %v654_v57 }
 0x93e   :  { %1045 = vmatpush.msrb.mxu3 %v2341_v3  ;;  %1139 = vmatpush.msra.mxu2 %v2411_v41 }
 0x940   :  { %1046 = vmatpush.msrb.mxu3 %v2347_v4  ;;  %1140 = vmatpush.msra.mxu2 %v2416_v42 }
 0x942   :  { %1047 = vmatpush.msrb.mxu3 %v2355_v6  ;;  %1141 = vmatpush.msra.mxu2 %v2424_v43 }
 0x944   :  { %1048 = vmatpush.msrb.mxu3 %v2364_v8  ;;  %1142 = vmatpush.msra.mxu2 %v2433_v44 }
 0x951   :  { %v628_v58 = vpop.permute.xlu0 %627 }
 0x952   :  { %2004 = vmatmul.msk.f32.vlgmr.msrb.gmra.mxu1 %vm154_vm2, %v628_v58 }
 0x953   :  { %981 = vmatpush.msrb.mxu1 %v2411_v41 }
 0x955   :  { %982 = vmatpush.msrb.mxu1 %v2416_v42 }
 0x957   :  { %983 = vmatpush.msrb.mxu1 %v2424_v43 }
 0x959   :  { %984 = vmatpush.msrb.mxu1 %v2433_v44 }
 0x9c0   :  { %v738_v61 = vpop.f32.mrf.mxu2  ;;  %v674_v0 = vpop.f32.mrf.mxu3 }
 0x9c1   :  { %v741_v62 = vadd.f32 %v738_v61, %v2574_v60 }
 0x9c3   :  { %2127 = vtanh.f32 %v741_v62  ;;  %v2008_v15 = vmul.f32 -1.442695, %v741_v62 }
 0x9c9   :  { %v2128_v63 = vpop.eup %2127 }
 0x9ca   :  { %767 = vrot.lane.b32.xlu1 %v2128_v63, %s2275_s1 }
 0x9cf   :  { %v648_v1 = vpop.f32.mrf.mxu1 }
 0x9d0   :  { %v675_v2 = vadd.f32 %v674_v0, %v648_v1 }
 0x9d2   :  { %v677_v5 = vadd.f32 %v2467_v54, %v675_v2 }
 0x9d4   :  { %2129 = vtanh.f32 %v677_v5  ;;  %v2006_v9 = vmul.f32 -1.442695, %v677_v5 }
 0x9d6   :  { %2131 = vpow2.f32 %v2006_v9 }
 0x9d7   :  { %2133 = vpow2.f32 %v2008_v15 }
 0x9da   :  { %v2130_v7 = vpop.eup %2129 }
 0x9db   :  { %700 = vrot.lane.b32.xlu2 %v2130_v7, %s2277_s21 }
 0x9dc   :  { %v2132_v10 = vpop.eup %2131 }
 0x9dd   :  { %v681_v11 = vadd.f32 1.0, %v2132_v10  ;;  %v2134_v18 = vpop.eup %2133 }
 0x9de   :  { %v745_v12 = vadd.f32 1.0, %v2134_v18 }
 0x9df   :  { %2135 = vrcp.f32 %v681_v11  ;;  %v693_v23 = vand.u32 2147483648, %v681_v11  ;;  %vm687_vm9 = vweird.f32 %v681_v11  ;;  %v691_v24 = vand.u32 2147483647, %v681_v11 }
 0x9e0   :  { %2137 = vrcp.f32 %v745_v12  ;;  %v757_v32 = vand.u32 2147483648, %v745_v12  ;;  %vm751_vm13 = vweird.f32 %v745_v12  ;;  %v755_v34 = vand.u32 2147483647, %v745_v12 }
 0x9e1   :  { %v694_v27 = vor.u32 1.1754944e-38, %v693_v23  ;;  %vm692_vm11 = vcmp.eq.f32.partialorder %v691_v24, 8.507059e+37 }
 0x9e2   :  { %v758_v36 = vor.u32 1.1754944e-38, %v757_v32  ;;  %vm756_vm15 = vcmp.eq.f32.partialorder %v755_v34, 8.507059e+37 }
 0x9e5   :  { %v2136_v13 = vpop.eup %2135 }
 0x9e6   :  { %v683_v14 = vmul.f32 %v2136_v13, %v681_v11  ;;  %v2138_v16 = vpop.eup %2137  ;;  %vm688_vm8 = vweird.f32 %v2136_v13 }
 0x9e7   :  { %v747_v19 = vmul.f32 %v2138_v16, %v745_v12  ;;  %vm689_vm10 = vmor %vm687_vm9, %vm688_vm8  ;;  %vm752_vm12 = vweird.f32 %v2138_v16 }
 0x9e8   :  { %v684_v17 = vsub.f32 1.0, %v683_v14  ;;  %vm753_vm14 = vmor %vm751_vm13, %vm752_vm12 }
 0x9e9   :  { %v748_v21 = vsub.f32 1.0, %v747_v19 }
 0x9ea   :  { %v685_v20 = vmul.f32 %v2136_v13, %v684_v17 }
 0x9eb   :  { %v749_v25 = vmul.f32 %v2138_v16, %v748_v21 }
 0x9ec   :  { %v686_v22 = vadd.f32 %v2136_v13, %v685_v20 }
 0x9ed   :  { %v750_v30 = vadd.f32 %v2138_v16, %v749_v25 }
 0x9ee   :  { %v690_v26 = vsel %vm689_vm10, %v2136_v13, %v686_v22 }
 0x9ef   :  { %v695_v29 = vsel %vm692_vm11, %v694_v27, %v690_v26  ;;  %v754_v35 = vsel %vm753_vm14, %v2138_v16, %v750_v30 }
 0x9f0   :  { %v759_v45 = vsel %vm756_vm15, %v758_v36, %v754_v35  ;;  %v698_v48 = vmul.f32 %v695_v29, %v2541_v33  ;;  %v28_v33 = vld [vmem:[%s2929_s0 + $0x10] sm:$0xff] }
 0x9f1   :  { %v765_v37 = vmul.f32 %v763_v39, %v759_v45  ;;  %1984 = vmatmul.msk.f32.gmra.mxu0 %vm42_vm1, %v28_v33 }
 0xa35   :  { %v701_v28 = vpop.permute.xlu2 %700 }
 0xa36   :  { %v703_v31 = vmul.f32 %v701_v28, %v695_v29 }
 0xa38   :  { %705 = vrot.lane.b32.xlu1 %v703_v31, %s2278_s22 }
 0xa3c   :  { %v768_v38 = vpop.permute.xlu1 %767 }
 0xa3d   :  { %v770_v46 = vmul.f32 %v768_v38, %v759_v45 }
 0xa3f   :  { %772 = vrot.lane.b32.xlu0 %v770_v46, %s2275_s1 }
 0xaaa   :  { %v706_v51 = vpop.permute.xlu1 %705 }
 0xaab   :  { %v2583_v52 = vadd.f32 %v706_v51, %v698_v48 }
 0xaad   :  { %2139 = vtanh.f32 %v2583_v52 }
 0xab1   :  { %v773_v53 = vpop.permute.xlu0 %772 }
 0xab2   :  { %v2587_v55 = vadd.f32 %v773_v53, %v765_v37 }
 0xab3   :  { %v2140_v56 = vpop.eup %2139 }
 0xab4   :  { %2141 = vtanh.f32 %v2587_v55  ;;  %711 = vrot.lane.b32.xlu0 %v2140_v56, %s2278_s22  ;;  %v920_v51 = vrot.slane %v2587_v55, 6 }
 0xaba   :  { %v2142_v57 = vpop.eup %2141 }
 0xabb   :  { %778 = vrot.lane.b32.xlu2 %v2142_v57, %s2275_s1 }
 0xb15   :  { %v779_v58 = vpop.permute.xlu2 %778 }
 0xb16   :  { %v781_v49 = vmul.f32 %v779_v58, %v759_v45 }
 0xb18   :  { %807 = vrot.lane.b32.xlu1 %v781_v49, %s2276_s18 }
 0xb26   :  { %v712_v59 = vpop.permute.xlu0 %711 }
 0xb27   :  { %v2597_v61 = vmul.f32 %v712_v59, %v695_v29 }
 0xb29   :  { %782 = vrot.lane.b32.xlu2 %v2597_v61, %s2279_s23 }
 0xb83   :  { %v783_v62 = vpop.permute.xlu2 %782 }
 0xb84   :  { %2010 = vmatmul.msk.f32.vlgmr.msra.gmra.mxu1 %vm154_vm2, %v783_v62 }
 0xb85   :  { %1203 = vmatpush.msra.mxu1 %v2341_v3  ;;  %v2614_v3 = vpop.f32.mrf.mxu0 }
 0xb87   :  { %1204 = vmatpush.msra.mxu1 %v2347_v4 }
 0xb89   :  { %1205 = vmatpush.msra.mxu1 %v2355_v6 }
 0xb8a   :  { %v808_v63 = vpop.permute.xlu1 %807 }
 0xb8b   :  { %2011 = vmatmul.msk.f32.vlgmr.msra.gmra.mxu3 %vm92_vm6, %v808_v63  ;;  %2013 = vmatmul.msk.f32.vlgmr.msrb.gmra.mxu0 %vm92_vm6, %v808_v63 }
 0xb8c   :  { %1206 = vmatpush.msra.mxu1 %v2364_v8  ;;  %1297 = vmatpush.msrb.mxu0 %v2411_v41 }
 0xb8d   :  { %2027 = vmatpush.msk.msra.mxu3 %vm52_vm0, %v2406_v40 }
 0xb8e   :  { %1298 = vmatpush.msrb.mxu0 %v2416_v42 }
 0xb90   :  { %1299 = vmatpush.msrb.mxu0 %v2424_v43 }
 0xb92   :  { %1300 = vmatpush.msrb.mxu0 %v2433_v44 }
 0xc01   :  { %v803_v1 = vpop.f32.mrf.mxu1 }
 0xc08   :  { %v892_v4 = vpop.f32.mrf.mxu0 }
 0xc09   :  { %v896_v6 = vrot.slane %v892_v4, 6 }
 0xc0b   :  { %v898_v0 = vadd.f32 %v896_v6, %v2574_v60 }
 0xc0d   :  { %2143 = vtanh.f32 %v898_v0  ;;  %v2014_v15 = vmul.f32 -1.442695, %v898_v0  ;;  %v2647_v0 = vld [vmem:[%s2927_s2 + $0x18] sm:$0xff] }
 0xc0e   :  { %v828_v8 = vpop.f32.mrf.mxu3 }
 0xc0f   :  { %v829_v2 = vadd.f32 %v828_v8, %v803_v1 }
 0xc11   :  { %v831_v5 = vadd.f32 %v2467_v54, %v829_v2 }
 0xc13   :  { %v2144_v7 = vpop.eup %2143  ;;  %2145 = vtanh.f32 %v831_v5  ;;  %v2012_v10 = vmul.f32 -1.442695, %v831_v5 }
 0xc14   :  { %924 = vrot.lane.b32.xlu0 %v2144_v7, %s2275_s1  ;;  %2147 = vpow2.f32 %v2014_v15 }
 0xc15   :  { %2149 = vpow2.f32 %v2012_v10 }
 0xc19   :  { %v2146_v9 = vpop.eup %2145 }
 0xc1a   :  { %854 = vrot.lane.b32.xlu1 %v2146_v9, %s2277_s21  ;;  %v2148_v11 = vpop.eup %2147 }
 0xc1b   :  { %v902_v18 = vadd.f32 1.0, %v2148_v11  ;;  %v2150_v12 = vpop.eup %2149 }
 0xc1c   :  { %v835_v13 = vadd.f32 1.0, %v2150_v12 }
 0xc1d   :  { %2151 = vrcp.f32 %v902_v18  ;;  %v914_v24 = vand.u32 2147483648, %v902_v18  ;;  %vm908_vm3 = vweird.f32 %v902_v18  ;;  %v912_v25 = vand.u32 2147483647, %v902_v18 }
 0xc1e   :  { %2153 = vrcp.f32 %v835_v13  ;;  %v847_v32 = vand.u32 2147483648, %v835_v13  ;;  %vm841_vm8 = vweird.f32 %v835_v13  ;;  %v845_v35 = vand.u32 2147483647, %v835_v13 }
 0xc1f   :  { %v915_v28 = vor.u32 1.1754944e-38, %v914_v24  ;;  %vm913_vm5 = vcmp.eq.f32.partialorder %v912_v25, 8.507059e+37 }
 0xc20   :  { %v848_v45 = vor.u32 1.1754944e-38, %v847_v32  ;;  %vm846_vm10 = vcmp.eq.f32.partialorder %v845_v35, 8.507059e+37 }
 0xc23   :  { %v2152_v14 = vpop.eup %2151 }
 0xc24   :  { %v904_v16 = vmul.f32 %v2152_v14, %v902_v18  ;;  %v2154_v17 = vpop.eup %2153  ;;  %vm909_vm1 = vweird.f32 %v2152_v14 }
 0xc25   :  { %v837_v20 = vmul.f32 %v2154_v17, %v835_v13  ;;  %vm910_vm4 = vmor %vm908_vm3, %vm909_vm1  ;;  %vm842_vm7 = vweird.f32 %v2154_v17 }
 0xc26   :  { %v905_v19 = vsub.f32 1.0, %v904_v16  ;;  %vm843_vm9 = vmor %vm841_vm8, %vm842_vm7 }
 0xc27   :  { %v838_v22 = vsub.f32 1.0, %v837_v20 }
 0xc28   :  { %v906_v21 = vmul.f32 %v2152_v14, %v905_v19 }
 0xc29   :  { %v839_v26 = vmul.f32 %v2154_v17, %v838_v22 }
 0xc2a   :  { %v907_v23 = vadd.f32 %v2152_v14, %v906_v21 }
 0xc2b   :  { %v840_v29 = vadd.f32 %v2154_v17, %v839_v26 }
 0xc2c   :  { %v911_v27 = vsel %vm910_vm4, %v2152_v14, %v907_v23 }
 0xc2d   :  { %v916_v31 = vsel %vm913_vm5, %v915_v28, %v911_v27  ;;  %v844_v36 = vsel %vm843_vm9, %v2154_v17, %v840_v29 }
 0xc2e   :  { %v849_v46 = vsel %vm846_vm10, %v848_v45, %v844_v36  ;;  %v922_v39 = vmul.f32 %v920_v51, %v916_v31 }
 0xc2f   :  { %v852_v57 = vmul.f32 %v849_v46, %v2583_v52 }
 0xc86   :  { %v925_v30 = vpop.permute.xlu0 %924 }
 0xc87   :  { %v927_v34 = vmul.f32 %v925_v30, %v916_v31 }
 0xc89   :  { %929 = vrot.lane.b32.xlu2 %v927_v34, %s2275_s1 }
 0xc8c   :  { %v855_v38 = vpop.permute.xlu1 %854 }
 0xc8d   :  { %v857_v48 = vmul.f32 %v855_v38, %v849_v46 }
 0xc8f   :  { %859 = vrot.lane.b32.xlu0 %v857_v48, %s2278_s22 }
 0xce3   :  { %v930_v37 = vpop.permute.xlu2 %929 }
 0xce4   :  { %v2623_v53 = vadd.f32 %v930_v37, %v922_v39 }
 0xce6   :  { %2155 = vtanh.f32 %v2623_v53  ;;  %v1078_v51 = vrot.slane %v2623_v53, 6 }
 0xcec   :  { %v2156_v56 = vpop.eup %2155 }
 0xced   :  { %935 = vrot.lane.b32.xlu1 %v2156_v56, %s2275_s1 }
 0xd01   :  { %v860_v33 = vpop.permute.xlu0 %859 }
 0xd02   :  { %v2628_v58 = vadd.f32 %v860_v33, %v852_v57 }
 0xd04   :  { %2157 = vtanh.f32 %v2628_v58 }
 0xd0a   :  { %v2158_v49 = vpop.eup %2157 }
 0xd0b   :  { %865 = vrot.lane.b32.xlu2 %v2158_v49, %s2278_s22 }
 0xd5f   :  { %v936_v55 = vpop.permute.xlu1 %935 }
 0xd60   :  { %v938_v59 = vmul.f32 %v936_v55, %v916_v31 }
 0xd62   :  { %v964_v62 = vrot.slane %v938_v59, 2 }
 0xd64   :  { %965 = vrot.lane.b32.xlu0 %v964_v62, %s2276_s18 }
 0xd65   :  { %v866_v63 = vpop.permute.xlu2 %865 }
 0xd66   :  { %v2633_v4 = vmul.f32 %v866_v63, %v849_v46 }
 0xd68   :  { %939 = vrot.lane.b32.xlu1 %v2633_v4, %s2279_s23 }
 0xdd6   :  { %v966_v52 = vpop.permute.xlu0 %965 }
 0xdd7   :  { %2017 = vmatmul.msk.f32.vlgmr.msrb.gmra.mxu1 %vm92_vm6, %v966_v52  ;;  %2019 = vmatmul.msk.f32.vlgmr.msrb.gmra.mxu3 %vm92_vm6, %v966_v52 }
 0xdd8   :  { %1451 = vmatpush.msrb.mxu3 %v2411_v41  ;;  %2033 = vmatpush.msk.msrb.mxu1 %vm52_vm0, %v2406_v40  ;;  %v2654_v41 = vld [vmem:[%s2927_s2 + $0x10] sm:$0xff]  ;;  %v2661_v40 = vld [vmem:[%s2927_s2 + $0x8] sm:$0xff] }
 0xdda   :  { %v940_v6 = vpop.permute.xlu1 %939  ;;  %1452 = vmatpush.msrb.mxu3 %v2416_v42  ;;  %v2667_v42 = vld [vmem:[%s2927_s2] sm:$0xff] }
 0xddb   :  { %2016 = vmatmul.msk.f32.vlgmr.msrb.gmra.mxu2 %vm154_vm2, %v940_v6 }
 0xddc   :  { %1361 = vmatpush.msrb.mxu2 %v2647_v0  ;;  %1453 = vmatpush.msrb.mxu3 %v2424_v43 }
 0xdde   :  { %1362 = vmatpush.msrb.mxu2 %v2654_v41  ;;  %1454 = vmatpush.msrb.mxu3 %v2433_v44 }
 0xde0   :  { %1363 = vmatpush.msrb.mxu2 %v2661_v40 }
 0xde2   :  { %1364 = vmatpush.msrb.mxu2 %v2667_v42 }
 0xe54   :  { %v986_v2 = vpop.f32.mrf.mxu1 }
 0xe5a   :  { %v1050_v43 = vpop.f32.mrf.mxu3 }
 0xe5b   :  { %v1054_v1 = vrot.slane %v1050_v43, 4  ;;  %v2696_v43 = vld [vmem:[%s2931_s4 + $0x18] sm:$0xff] }
 0xe5d   :  { %v1056_v8 = vadd.f32 %v1054_v1, %v2574_v60  ;;  %v2702_v1 = vld [vmem:[%s2930_s5] sm:$0xf] }
 0xe5e   :  { %v960_v44 = vpop.f32.mrf.mxu2 }
 0xe5f   :  { %2159 = vtanh.f32 %v1056_v8  ;;  %v987_v5 = vadd.f32 %v986_v2, %v960_v44  ;;  %v2020_v10 = vmul.f32 -1.442695, %v1056_v8  ;;  %v2709_v8 = vld [vmem:[%s2931_s4 + $0x10] sm:$0xff]  ;;  %v2715_v2 = vld [vmem:[%s2931_s4 + $0x8] sm:$0xff]  ;;  %v2721_v44 = vld [vmem:[%s2931_s4] sm:$0xff] }
 0xe61   :  { %v989_v7 = vadd.f32 %v2467_v54, %v987_v5 }
 0xe63   :  { %2161 = vtanh.f32 %v989_v7  ;;  %v2018_v14 = vmul.f32 -1.442695, %v989_v7 }
 0xe64   :  { %2163 = vpow2.f32 %v2020_v10 }
 0xe65   :  { %v2160_v9 = vpop.eup %2159 }
 0xe66   :  { %1082 = vrot.lane.b32.xlu2 %v2160_v9, %s2275_s1 }
 0xe69   :  { %v2162_v15 = vpop.eup %2161 }
 0xe6a   :  { %1012 = vrot.lane.b32.xlu0 %v2162_v15, %s2277_s21  ;;  %v2164_v11 = vpop.eup %2163 }
 0xe6b   :  { %v1060_v18 = vadd.f32 1.0, %v2164_v11 }
 0xe6d   :  { %2165 = vrcp.f32 %v1060_v18  ;;  %v1072_v20 = vand.u32 2147483648, %v1060_v18  ;;  %vm1066_vm12 = vweird.f32 %v1060_v18  ;;  %v1070_v21 = vand.u32 2147483647, %v1060_v18 }
 0xe6e   :  { %2167 = vpow2.f32 %v2018_v14 }
 0xe6f   :  { %v1073_v24 = vor.u32 1.1754944e-38, %v1072_v20  ;;  %vm1071_vm14 = vcmp.eq.f32.partialorder %v1070_v21, 8.507059e+37 }
 0xe73   :  { %v2166_v12 = vpop.eup %2165 }
 0xe74   :  { %v1062_v13 = vmul.f32 %v2166_v12, %v1060_v18  ;;  %v2168_v19 = vpop.eup %2167  ;;  %vm1067_vm11 = vweird.f32 %v2166_v12 }
 0xe75   :  { %v993_v22 = vadd.f32 1.0, %v2168_v19  ;;  %vm1068_vm13 = vmor %vm1066_vm12, %vm1067_vm11 }
 0xe76   :  { %v1063_v16 = vsub.f32 1.0, %v1062_v13  ;;  %v2734_v13 = vld [vmem:[%s2932_s6] ss:$0 sm:$0xff] }
 0xe77   :  { %2169 = vrcp.f32 %v993_v22  ;;  %v1005_v34 = vand.u32 2147483648, %v993_v22  ;;  %vm999_vm1 = vweird.f32 %v993_v22  ;;  %v1003_v35 = vand.u32 2147483647, %v993_v22 }
 0xe78   :  { %v1064_v17 = vmul.f32 %v2166_v12, %v1063_v16 }
 0xe79   :  { %v1006_v45 = vor.u32 1.1754944e-38, %v1005_v34  ;;  %vm1004_vm4 = vcmp.eq.f32.partialorder %v1003_v35, 8.507059e+37 }
 0xe7a   :  { %v1065_v54 = vadd.f32 %v2166_v12, %v1064_v17 }
 0xe7c   :  { %v1069_v23 = vsel %vm1068_vm13, %v2166_v12, %v1065_v54 }
 0xe7d   :  { %v1074_v25 = vsel %vm1071_vm14, %v1073_v24, %v1069_v23  ;;  %v2170_v28 = vpop.eup %2169 }
 0xe7e   :  { %v995_v29 = vmul.f32 %v2170_v28, %v993_v22  ;;  %vm1000_vm15 = vweird.f32 %v2170_v28  ;;  %v1080_v39 = vmul.f32 %v1078_v51, %v1074_v25 }
 0xe7f   :  { %vm1001_vm3 = vmor %vm999_vm1, %vm1000_vm15 }
 0xe80   :  { %v996_v30 = vsub.f32 1.0, %v995_v29 }
 0xe82   :  { %v997_v31 = vmul.f32 %v2170_v28, %v996_v30 }
 0xe84   :  { %v998_v32 = vadd.f32 %v2170_v28, %v997_v31 }
 0xe86   :  { %v1002_v36 = vsel %vm1001_vm3, %v2170_v28, %v998_v32 }
 0xe87   :  { %v1007_v46 = vsel %vm1004_vm4, %v1006_v45, %v1002_v36 }
 0xe88   :  { %v1010_v57 = vmul.f32 %v1007_v46, %v2628_v58 }
 0xec0   :  { %v1083_v26 = vpop.permute.xlu2 %1082 }
 0xec1   :  { %v1085_v27 = vmul.f32 %v1083_v26, %v1074_v25 }
 0xec3   :  { %1087 = vrot.lane.b32.xlu1 %v1085_v27, %s2275_s1 }
 0xedc   :  { %v1013_v38 = vpop.permute.xlu0 %1012 }
 0xedd   :  { %v1015_v48 = vmul.f32 %v1013_v38, %v1007_v46 }
 0xedf   :  { %1017 = vrot.lane.b32.xlu2 %v1015_v48, %s2278_s22 }
 0xf35   :  { %v1088_v37 = vpop.permute.xlu1 %1087 }
 0xf36   :  { %v2677_v56 = vadd.f32 %v1088_v37, %v1080_v39 }
 0xf38   :  { %2171 = vtanh.f32 %v2677_v56 }
 0xf39   :  { %v1018_v33 = vpop.permute.xlu2 %1017 }
 0xf3a   :  { %v2681_v49 = vadd.f32 %v1018_v33, %v1010_v57 }
 0xf3c   :  { %2173 = vtanh.f32 %v2681_v49 }
 0xf3e   :  { %v2172_v55 = vpop.eup %2171 }
 0xf3f   :  { %1093 = vrot.lane.b32.xlu0 %v2172_v55, %s2275_s1 }
 0xf42   :  { %v2174_v59 = vpop.eup %2173 }
 0xf43   :  { %1023 = vrot.lane.b32.xlu1 %v2174_v59, %s2278_s22  ;;  %v1236_v59 = vrot.slane %v2677_v56, 6 }
 0xfb1   :  { %v1094_v53 = vpop.permute.xlu0 %1093 }
 0xfb2   :  { %v1096_v62 = vmul.f32 %v1094_v53, %v1074_v25 }
 0xfb4   :  { %v1122_v63 = vrot.slane %v1096_v62, 4 }
 0xfb5   :  { %v1024_v52 = vpop.permute.xlu1 %1023 }
 0xfb6   :  { %v2686_v6 = vmul.f32 %v1024_v52, %v1007_v46  ;;  %1123 = vrot.lane.b32.xlu2 %v1122_v63, %s2276_s18 }
 0xfb8   :  { %1097 = vrot.lane.b32.xlu0 %v2686_v6, %s2279_s23 }
0x1010   :  { %v1124_v58 = vpop.permute.xlu2 %1123 }
0x1011   :  { %2023 = vmatmul.msk.f32.vlgmr.msra.gmra.mxu2 %vm92_vm6, %v1124_v58  ;;  %2025 = vmatmul.msk.f32.vlgmr.msra.gmra.mxu1 %vm92_vm6, %v1124_v58 }
0x1012   :  { %1609 = vmatpush.msra.mxu1 %v2696_v43  ;;  %2039 = vmatpush.msk.msra.mxu2 %vm52_vm0, %v2702_v1 }
0x1014   :  { %1610 = vmatpush.msra.mxu1 %v2709_v8 }
0x1016   :  { %1611 = vmatpush.msra.mxu1 %v2715_v2 }
0x1018   :  { %1612 = vmatpush.msra.mxu1 %v2721_v44 }
0x102a   :  { %v1098_v5 = vpop.permute.xlu0 %1097 }
0x102b   :  { %2022 = vmatmul.msk.f32.vlgmr.msra.gmra.mxu0 %vm154_vm2, %v1098_v5 }
0x102c   :  { %1515 = vmatpush.msra.mxu0 %v2647_v0 }
0x102e   :  { %1516 = vmatpush.msra.mxu0 %v2654_v41 }
0x1030   :  { %1517 = vmatpush.msra.mxu0 %v2661_v40 }
0x1032   :  { %1518 = vmatpush.msra.mxu0 %v2667_v42 }
0x108e   :  { %v1208_v7 = vpop.f32.mrf.mxu1 }
0x108f   :  { %v1212_v9 = vrot.slane %v1208_v7, 2 }
0x1091   :  { %v1214_v15 = vadd.f32 %v1212_v9, %v2574_v60 }
0x1093   :  { %2175 = vtanh.f32 %v1214_v15  ;;  %v2026_v17 = vmul.f32 -1.442695, %v1214_v15 }
0x1094   :  { %v1144_v11 = vpop.f32.mrf.mxu2 }
0x1099   :  { %v2176_v10 = vpop.eup %2175 }
0x109a   :  { %1240 = vrot.lane.b32.xlu1 %v2176_v10, %s2275_s1 }
0x10a8   :  { %v1118_v18 = vpop.f32.mrf.mxu0 }
0x10a9   :  { %v1145_v12 = vadd.f32 %v1144_v11, %v1118_v18 }
0x10ab   :  { %v1147_v14 = vadd.f32 %v2734_v13, %v1145_v12 }
0x10ad   :  { %2177 = vtanh.f32 %v1147_v14  ;;  %v2024_v60 = vmul.f32 -1.442695, %v1147_v14  ;;  %v2273_v14 = vld [vmem:[%s2928_s3] ss:$0 sm:$0xff]  ;;  %s2280_s3 = smov 124  }
0x10ae   :  { %2179 = vpow2.f32 %v2026_v17 }
0x10af   :  { %2181 = vpow2.f32 %v2024_v60 }
0x10b3   :  { %v2178_v16 = vpop.eup %2177 }
0x10b4   :  { %1170 = vrot.lane.b32.xlu2 %v2178_v16, %s2277_s21  ;;  %v2180_v19 = vpop.eup %2179  ;;  %v2772_v16 = vadd.f32 %v2273_v14, %v2614_v3 }
0x10b5   :  { %v2182_v54 = vpop.eup %2181  ;;  %v1218_v20 = vadd.f32 1.0, %v2180_v19 }
0x10b6   :  { %v1151_v21 = vadd.f32 1.0, %v2182_v54 }
0x10b7   :  { %2183 = vrcp.f32 %v1218_v20  ;;  %v1230_v31 = vand.u32 2147483648, %v1218_v20  ;;  %vm1224_vm7 = vweird.f32 %v1218_v20  ;;  %v1228_v32 = vand.u32 2147483647, %v1218_v20 }
0x10b8   :  { %2185 = vrcp.f32 %v1151_v21  ;;  %v1163_v35 = vand.u32 2147483648, %v1151_v21  ;;  %vm1157_vm10 = vweird.f32 %v1151_v21  ;;  %v1161_v45 = vand.u32 2147483647, %v1151_v21 }
0x10b9   :  { %v1231_v38 = vor.u32 1.1754944e-38, %v1230_v31  ;;  %vm1229_vm12 = vcmp.eq.f32.partialorder %v1228_v32, 8.507059e+37 }
0x10ba   :  { %v1164_v39 = vor.u32 1.1754944e-38, %v1163_v35  ;;  %vm1162_vm13 = vcmp.eq.f32.partialorder %v1161_v45, 8.507059e+37 }
0x10bd   :  { %v2184_v22 = vpop.eup %2183 }
0x10be   :  { %v2186_v23 = vpop.eup %2185  ;;  %v1220_v24 = vmul.f32 %v2184_v22, %v1218_v20  ;;  %vm1225_vm5 = vweird.f32 %v2184_v22 }
0x10bf   :  { %v1153_v25 = vmul.f32 %v2186_v23, %v1151_v21  ;;  %vm1158_vm8 = vweird.f32 %v2186_v23  ;;  %vm1226_vm9 = vmor %vm1224_vm7, %vm1225_vm5 }
0x10c0   :  { %v1221_v26 = vsub.f32 1.0, %v1220_v24  ;;  %vm1159_vm11 = vmor %vm1157_vm10, %vm1158_vm8 }
0x10c1   :  { %v1154_v27 = vsub.f32 1.0, %v1153_v25 }
0x10c2   :  { %v1222_v28 = vmul.f32 %v2184_v22, %v1221_v26 }
0x10c3   :  { %v1155_v29 = vmul.f32 %v2186_v23, %v1154_v27 }
0x10c4   :  { %v1223_v30 = vadd.f32 %v2184_v22, %v1222_v28 }
0x10c5   :  { %v1156_v34 = vadd.f32 %v2186_v23, %v1155_v29 }
0x10c6   :  { %v1227_v36 = vsel %vm1226_vm9, %v2184_v22, %v1223_v30 }
0x10c7   :  { %v1160_v46 = vsel %vm1159_vm11, %v2186_v23, %v1156_v34  ;;  %v1232_v51 = vsel %vm1229_vm12, %v1231_v38, %v1227_v36 }
0x10c8   :  { %v1165_v33 = vsel %vm1162_vm13, %v1164_v39, %v1160_v46  ;;  %v1238_v53 = vmul.f32 %v1236_v59, %v1232_v51 }
0x10c9   :  { %v1168_v52 = vmul.f32 %v1165_v33, %v2681_v49 }
0x110c   :  { %v1241_v48 = vpop.permute.xlu1 %1240 }
0x110d   :  { %v1243_v37 = vmul.f32 %v1241_v48, %v1232_v51 }
0x110e   :  { %v1171_v57 = vpop.permute.xlu2 %1170 }
0x110f   :  { %v1173_v55 = vmul.f32 %v1171_v57, %v1165_v33  ;;  %1245 = vrot.lane.b32.xlu0 %v1243_v37, %s2275_s1 }
0x1111   :  { %1175 = vrot.lane.b32.xlu1 %v1173_v55, %s2278_s22 }
0x1181   :  { %v1246_v62 = vpop.permute.xlu0 %1245 }
0x1182   :  { %v2741_v63 = vadd.f32 %v1246_v62, %v1238_v53 }
0x1183   :  { %v1176_v58 = vpop.permute.xlu1 %1175 }
0x1184   :  { %2187 = vtanh.f32 %v2741_v63  ;;  %v2745_v5 = vadd.f32 %v1176_v58, %v1168_v52 }
0x1186   :  { %2189 = vtanh.f32 %v2745_v5 }
0x118a   :  { %v2188_v7 = vpop.eup %2187 }
0x118b   :  { %1251 = vrot.lane.b32.xlu2 %v2188_v7, %s2275_s1 }
0x118c   :  { %v2190_v9 = vpop.eup %2189 }
0x118d   :  { %1181 = vrot.lane.b32.xlu0 %v2190_v9, %s2278_s22 }
0x11e5   :  { %v1252_v56 = vpop.permute.xlu2 %1251 }
0x11e6   :  { %v1254_v15 = vmul.f32 %v1252_v56, %v1232_v51  ;;  %v1391_v56 = vrot.slane %v2741_v63, 6 }
0x11e8   :  { %v1280_v10 = vrot.slane %v1254_v15, 6 }
0x11ea   :  { %1281 = vrot.lane.b32.xlu1 %v1280_v10, %s2276_s18 }
0x11ff   :  { %v1182_v11 = vpop.permute.xlu0 %1181 }
0x1200   :  { %v2751_v49 = vmul.f32 %v1182_v11, %v1165_v33 }
0x1202   :  { %1255 = vrot.lane.b32.xlu2 %v2751_v49, %s2279_s23 }
0x125c   :  { %v1282_v18 = vpop.permute.xlu1 %1281  ;;  %v1256_v12 = vpop.permute.xlu2 %1255 }
0x125d   :  { %2028 = vmatmul.msk.f32.vlgmr.msra.gmra.mxu3 %vm154_vm2, %v1256_v12  ;;  %2029 = vmatmul.msk.f32.vlgmr.msrb.gmra.mxu0 %vm92_vm6, %v1282_v18 }
0x125e   :  { %2031 = vmatmul.msk.f32.vlgmr.msrb.gmra.mxu2 %vm92_vm6, %v1282_v18  ;;  %1673 = vmatpush.msra.mxu3 %v2647_v0 }
0x125f   :  { %1767 = vmatpush.msrb.mxu2 %v2696_v43  ;;  %2045 = vmatpush.msk.msrb.mxu0 %vm52_vm0, %v2702_v1 }
0x1260   :  { %1674 = vmatpush.msra.mxu3 %v2654_v41 }
0x1261   :  { %1768 = vmatpush.msrb.mxu2 %v2709_v8 }
0x1262   :  { %1675 = vmatpush.msra.mxu3 %v2661_v40 }
0x1263   :  { %1769 = vmatpush.msrb.mxu2 %v2715_v2 }
0x1264   :  { %1676 = vmatpush.msra.mxu3 %v2667_v42 }
0x1265   :  { %1770 = vmatpush.msrb.mxu2 %v2721_v44 }
0x12da   :  { %v1302_v17 = vpop.f32.mrf.mxu0 }
0x12e0   :  { %v1276_v60 = vpop.f32.mrf.mxu3 }
0x12e1   :  { %v1303_v19 = vadd.f32 %v1302_v17, %v1276_v60  ;;  %v1366_v54 = vpop.f32.mrf.mxu2 }
0x12e2   :  { %v1369_v20 = vadd.f32 %v1366_v54, %v2772_v16 }
0x12e3   :  { %v1305_v21 = vadd.f32 %v2734_v13, %v1303_v19 }
0x12e4   :  { %2191 = vtanh.f32 %v1369_v20  ;;  %v2032_v24 = vmul.f32 -1.442695, %v1369_v20 }
0x12e5   :  { %2193 = vtanh.f32 %v1305_v21  ;;  %v2030_v25 = vmul.f32 -1.442695, %v1305_v21 }
0x12e6   :  { %2195 = vpow2.f32 %v2032_v24 }
0x12e7   :  { %2197 = vpow2.f32 %v2030_v25 }
0x12ea   :  { %v2192_v22 = vpop.eup %2191 }
0x12eb   :  { %v2194_v23 = vpop.eup %2193  ;;  %1395 = vrot.lane.b32.xlu0 %v2192_v22, %s2275_s1 }
0x12ec   :  { %1328 = vrot.lane.b32.xlu1 %v2194_v23, %s2277_s21  ;;  %v2196_v3 = vpop.eup %2195 }
0x12ed   :  { %v2198_v26 = vpop.eup %2197  ;;  %v1373_v27 = vadd.f32 1.0, %v2196_v3 }
0x12ee   :  { %v1309_v28 = vadd.f32 1.0, %v2198_v26 }
0x12ef   :  { %2199 = vrcp.f32 %v1373_v27  ;;  %v1385_v46 = vand.u32 2147483648, %v1373_v27  ;;  %vm1379_vm1 = vweird.f32 %v1373_v27  ;;  %v1383_v51 = vand.u32 2147483647, %v1373_v27 }
0x12f0   :  { %2201 = vrcp.f32 %v1309_v28  ;;  %v1321_v39 = vand.u32 2147483648, %v1309_v28  ;;  %vm1315_vm4 = vweird.f32 %v1309_v28  ;;  %v1319_v37 = vand.u32 2147483647, %v1309_v28 }
0x12f1   :  { %v1386_v33 = vor.u32 1.1754944e-38, %v1385_v46  ;;  %vm1384_vm7 = vcmp.eq.f32.partialorder %v1383_v51, 8.507059e+37 }
0x12f2   :  { %v1322_v59 = vor.u32 1.1754944e-38, %v1321_v39  ;;  %vm1320_vm8 = vcmp.eq.f32.partialorder %v1319_v37, 8.507059e+37 }
0x12f5   :  { %v2200_v29 = vpop.eup %2199 }
0x12f6   :  { %v2202_v30 = vpop.eup %2201  ;;  %v1375_v31 = vmul.f32 %v2200_v29, %v1373_v27  ;;  %vm1380_vm14 = vweird.f32 %v2200_v29 }
0x12f7   :  { %v1311_v32 = vmul.f32 %v2202_v30, %v1309_v28  ;;  %vm1316_vm15 = vweird.f32 %v2202_v30  ;;  %vm1381_vm3 = vmor %vm1379_vm1, %vm1380_vm14 }
0x12f8   :  { %v1376_v34 = vsub.f32 1.0, %v1375_v31  ;;  %vm1317_vm5 = vmor %vm1315_vm4, %vm1316_vm15 }
0x12f9   :  { %v1312_v35 = vsub.f32 1.0, %v1311_v32 }
0x12fa   :  { %v1377_v36 = vmul.f32 %v2200_v29, %v1376_v34 }
0x12fb   :  { %v1313_v45 = vmul.f32 %v2202_v30, %v1312_v35 }
0x12fc   :  { %v1378_v38 = vadd.f32 %v2200_v29, %v1377_v36 }
0x12fd   :  { %v1314_v48 = vadd.f32 %v2202_v30, %v1313_v45 }
0x12fe   :  { %v1382_v57 = vsel %vm1381_vm3, %v2200_v29, %v1378_v38 }
0x12ff   :  { %v1318_v55 = vsel %vm1317_vm5, %v2202_v30, %v1314_v48  ;;  %v1387_v53 = vsel %vm1384_vm7, %v1386_v33, %v1382_v57 }
0x1300   :  { %v1323_v7 = vsel %vm1320_vm8, %v1322_v59, %v1318_v55  ;;  %v1393_v15 = vmul.f32 %v1391_v56, %v1387_v53 }
0x1301   :  { %v1326_v12 = vmul.f32 %v1323_v7, %v2745_v5 }
0x135d   :  { %v1396_v62 = vpop.permute.xlu0 %1395 }
0x135e   :  { %v1398_v52 = vmul.f32 %v1396_v62, %v1387_v53  ;;  %v1329_v58 = vpop.permute.xlu1 %1328 }
0x135f   :  { %v1331_v9 = vmul.f32 %v1329_v58, %v1323_v7 }
0x1360   :  { %1400 = vrot.lane.b32.xlu2 %v1398_v52, %s2275_s1 }
0x1361   :  { %1333 = vrot.lane.b32.xlu0 %v1331_v9, %s2278_s22 }
0x13ba   :  { %v1401_v10 = vpop.permute.xlu2 %1400 }
0x13bb   :  { %v2781_v11 = vadd.f32 %v1401_v10, %v1393_v15 }
0x13bd   :  { %2203 = vtanh.f32 %v2781_v11 }
0x13c3   :  { %v2204_v18 = vpop.eup %2203 }
0x13c4   :  { %1406 = vrot.lane.b32.xlu1 %v2204_v18, %s2275_s1 }
0x13d3   :  { %v1334_v14 = vpop.permute.xlu0 %1333 }
0x13d4   :  { %v2786_v17 = vadd.f32 %v1334_v14, %v1326_v12 }
0x13d6   :  { %2205 = vtanh.f32 %v2786_v17 }
0x13dc   :  { %v2206_v60 = vpop.eup %2205 }
0x13dd   :  { %1339 = vrot.lane.b32.xlu2 %v2206_v60, %s2278_s22 }
0x1436   :  { %v1407_v63 = vpop.permute.xlu1 %1406 }
0x1437   :  { %v1409_v19 = vmul.f32 %v1407_v63, %v1387_v53  ;;  %v1340_v54 = vpop.permute.xlu2 %1339 }
0x1438   :  { %v2790_v20 = vmul.f32 %v1340_v54, %v1323_v7  ;;  %v1548_v7 = vrot.slane %v2781_v11, 6 }
0x1439   :  { %1435 = vrot.lane.b32.xlu0 %v1409_v19, %s2276_s18 }
0x143a   :  { %1410 = vrot.lane.b32.xlu1 %v2790_v20, %s2279_s23 }
0x14ab   :  { %v1436_v21 = vpop.permute.xlu0 %1435 }
0x14ac   :  { %2035 = vmatmul.msk.f32.vlgmr.msrb.gmra.mxu3 %vm92_vm6, %v1436_v21  ;;  %2037 = vmatmul.msk.f32.vlgmr.msra.gmra.mxu0 %vm92_vm6, %v1436_v21  ;;  %v1411_v5 = vpop.permute.xlu1 %1410 }
0x14ad   :  { %2034 = vmatmul.msk.f32.vlgmr.msrb.gmra.mxu1 %vm154_vm2, %v1411_v5  ;;  %1925 = vmatpush.msra.mxu0 %v2696_v43 }
0x14ae   :  { %1831 = vmatpush.msrb.mxu1 %v2647_v0  ;;  %2051 = vmatpush.msk.msrb.mxu3 %vm52_vm0, %v2702_v1 }
0x14af   :  { %1926 = vmatpush.msra.mxu0 %v2709_v8 }
0x14b0   :  { %1832 = vmatpush.msrb.mxu1 %v2654_v41 }
0x14b1   :  { %1927 = vmatpush.msra.mxu0 %v2715_v2 }
0x14b2   :  { %1833 = vmatpush.msrb.mxu1 %v2661_v40 }
0x14b3   :  { %1928 = vmatpush.msra.mxu0 %v2721_v44 }
0x14b4   :  { %1834 = vmatpush.msrb.mxu1 %v2667_v42 }
0x1529   :  { %v1520_v22 = vpop.f32.mrf.mxu0 }
0x152a   :  { %v1524_v23 = vrot.slane %v1520_v22, 6  ;;  %v1431_v0 = vpop.f32.mrf.mxu1 }
0x152c   :  { %v1526_v43 = vadd.f32 %v1524_v23, %v2772_v16 }
0x152e   :  { %2207 = vtanh.f32 %v1526_v43  ;;  %v2038_v40 = vmul.f32 -1.442695, %v1526_v43 }
0x152f   :  { %v1456_v24 = vpop.f32.mrf.mxu3 }
0x1530   :  { %v1457_v1 = vadd.f32 %v1456_v24, %v1431_v0 }
0x1532   :  { %v1459_v8 = vadd.f32 %v2734_v13, %v1457_v1 }
0x1534   :  { %v2208_v25 = vpop.eup %2207  ;;  %2209 = vtanh.f32 %v1459_v8  ;;  %v2036_v26 = vmul.f32 -1.442695, %v1459_v8 }
0x1535   :  { %1552 = vrot.lane.b32.xlu2 %v2208_v25, %s2275_s1  ;;  %2211 = vpow2.f32 %v2038_v40 }
0x153a   :  { %v2210_v41 = vpop.eup %2209 }
0x153b   :  { %1482 = vrot.lane.b32.xlu0 %v2210_v41, %s2277_s21  ;;  %v2212_v42 = vpop.eup %2211 }
0x153c   :  { %v1530_v2 = vadd.f32 1.0, %v2212_v42 }
0x153e   :  { %2213 = vrcp.f32 %v1530_v2  ;;  %v1542_v30 = vand.u32 2147483648, %v1530_v2  ;;  %vm1536_vm9 = vweird.f32 %v1530_v2  ;;  %v1540_v32 = vand.u32 2147483647, %v1530_v2 }
0x153f   :  { %2215 = vpow2.f32 %v2036_v26 }
0x1540   :  { %v1543_v36 = vor.u32 1.1754944e-38, %v1542_v30  ;;  %vm1541_vm11 = vcmp.eq.f32.partialorder %v1540_v32, 8.507059e+37 }
0x1544   :  { %v2214_v44 = vpop.eup %2213 }
0x1545   :  { %v1532_v3 = vmul.f32 %v2214_v44, %v1530_v2  ;;  %vm1537_vm0 = vweird.f32 %v2214_v44  ;;  %v2216_v31 = vpop.eup %2215 }
0x1546   :  { %vm1538_vm10 = vmor %vm1536_vm9, %vm1537_vm0  ;;  %v1463_v35 = vadd.f32 1.0, %v2216_v31 }
0x1547   :  { %v1533_v27 = vsub.f32 1.0, %v1532_v3 }
0x1548   :  { %2217 = vrcp.f32 %v1463_v35  ;;  %v1475_v33 = vand.u32 2147483648, %v1463_v35  ;;  %vm1469_vm13 = vweird.f32 %v1463_v35  ;;  %v1473_v55 = vand.u32 2147483647, %v1463_v35 }
0x1549   :  { %v1534_v28 = vmul.f32 %v2214_v44, %v1533_v27 }
0x154a   :  { %v1476_v53 = vor.u32 1.1754944e-38, %v1475_v33  ;;  %vm1474_vm15 = vcmp.eq.f32.partialorder %v1473_v55, 8.507059e+37 }
0x154b   :  { %v1535_v29 = vadd.f32 %v2214_v44, %v1534_v28 }
0x154d   :  { %v1539_v34 = vsel %vm1538_vm10, %v2214_v44, %v1535_v29 }
0x154e   :  { %v1544_v38 = vsel %vm1541_vm11, %v1543_v36, %v1539_v34  ;;  %v2218_v48 = vpop.eup %2217 }
0x154f   :  { %v1465_v51 = vmul.f32 %v2218_v48, %v1463_v35  ;;  %vm1470_vm12 = vweird.f32 %v2218_v48  ;;  %v1550_v9 = vmul.f32 %v1548_v7, %v1544_v38 }
0x1550   :  { %vm1471_vm14 = vmor %vm1469_vm13, %vm1470_vm12 }
0x1551   :  { %v1466_v39 = vsub.f32 1.0, %v1465_v51 }
0x1553   :  { %v1467_v37 = vmul.f32 %v2218_v48, %v1466_v39 }
0x1555   :  { %v1468_v57 = vadd.f32 %v2218_v48, %v1467_v37 }
0x1557   :  { %v1472_v59 = vsel %vm1471_vm14, %v2218_v48, %v1468_v57 }
0x1558   :  { %v1477_v52 = vsel %vm1474_vm15, %v1476_v53, %v1472_v59 }
0x1559   :  { %v1480_v10 = vmul.f32 %v1477_v52, %v2786_v17 }
0x158f   :  { %v1553_v45 = vpop.permute.xlu2 %1552 }
0x1590   :  { %v1555_v46 = vmul.f32 %v1553_v45, %v1544_v38 }
0x1592   :  { %1557 = vrot.lane.b32.xlu1 %v1555_v46, %s2275_s1 }
0x15ad   :  { %v1483_v62 = vpop.permute.xlu0 %1482 }
0x15ae   :  { %v1485_v58 = vmul.f32 %v1483_v62, %v1477_v52 }
0x15b0   :  { %1487 = vrot.lane.b32.xlu2 %v1485_v58, %s2278_s22 }
0x1604   :  { %v1558_v56 = vpop.permute.xlu1 %1557 }
0x1605   :  { %v2815_v15 = vadd.f32 %v1558_v56, %v1550_v9 }
0x1607   :  { %2219 = vtanh.f32 %v2815_v15  ;;  %v1706_v7 = vrot.slane %v2815_v15, 6 }
0x160a   :  { %v1488_v18 = vpop.permute.xlu2 %1487 }
0x160b   :  { %v2819_v12 = vadd.f32 %v1488_v18, %v1480_v10 }
0x160d   :  { %v2220_v14 = vpop.eup %2219  ;;  %2221 = vtanh.f32 %v2819_v12 }
0x160e   :  { %1563 = vrot.lane.b32.xlu0 %v2220_v14, %s2275_s1 }
0x1613   :  { %v2222_v60 = vpop.eup %2221 }
0x1614   :  { %1493 = vrot.lane.b32.xlu1 %v2222_v60, %s2278_s22 }
0x1680   :  { %v1564_v11 = vpop.permute.xlu0 %1563 }
0x1681   :  { %v1566_v63 = vmul.f32 %v1564_v11, %v1544_v38 }
0x1683   :  { %v1592_v19 = vrot.slane %v1566_v63, 2 }
0x1685   :  { %1593 = vrot.lane.b32.xlu2 %v1592_v19, %s2276_s18 }
0x1686   :  { %v1494_v54 = vpop.permute.xlu1 %1493 }
0x1687   :  { %v2825_v21 = vmul.f32 %v1494_v54, %v1477_v52 }
0x1689   :  { %1567 = vrot.lane.b32.xlu0 %v2825_v21, %s2279_s23 }
0x16df   :  { %v1594_v17 = vpop.permute.xlu2 %1593 }
0x16e0   :  { %2041 = vmatmul.msk.f32.vlgmr.msra.gmra.mxu1 %vm92_vm6, %v1594_v17  ;;  %2043 = vmatmul.msk.f32.vlgmr.msra.gmra.mxu3 %vm92_vm6, %v1594_v17 }
0x16fb   :  { %v1568_v5 = vpop.permute.xlu0 %1567 }
0x16fc   :  { %2040 = vmatmul.msk.f32.vlgmr.msra.gmra.mxu2 %vm154_vm2, %v1568_v5 }
0x175d   :  { %v1614_v24 = vpop.f32.mrf.mxu1 }
0x1763   :  { %v1678_v22 = vpop.f32.mrf.mxu3 }
0x1764   :  { %v1682_v23 = vrot.slane %v1678_v22, 4 }
0x1766   :  { %v1684_v43 = vadd.f32 %v1682_v23, %v2772_v16 }
0x1768   :  { %2223 = vtanh.f32 %v1684_v43  ;;  %v2044_v40 = vmul.f32 -1.442695, %v1684_v43 }
0x176e   :  { %v2224_v0 = vpop.eup %2223 }
0x176f   :  { %1710 = vrot.lane.b32.xlu1 %v2224_v0, %s2275_s1 }
0x177f   :  { %v1588_v1 = vpop.f32.mrf.mxu2 }
0x1780   :  { %v1615_v8 = vadd.f32 %v1614_v24, %v1588_v1 }
0x1782   :  { %v1617_v25 = vadd.f32 %v2734_v13, %v1615_v8 }
0x1784   :  { %2225 = vtanh.f32 %v1617_v25  ;;  %v2042_v42 = vmul.f32 -1.442695, %v1617_v25 }
0x1785   :  { %2227 = vpow2.f32 %v2044_v40 }
0x1786   :  { %2229 = vpow2.f32 %v2042_v42 }
0x178a   :  { %v2226_v41 = vpop.eup %2225 }
0x178b   :  { %1640 = vrot.lane.b32.xlu2 %v2226_v41, %s2277_s21  ;;  %v2228_v2 = vpop.eup %2227 }
0x178c   :  { %v1688_v44 = vadd.f32 1.0, %v2228_v2  ;;  %v2230_v3 = vpop.eup %2229 }
0x178d   :  { %v1621_v26 = vadd.f32 1.0, %v2230_v3 }
0x178e   :  { %2231 = vrcp.f32 %v1688_v44  ;;  %v1700_v45 = vand.u32 2147483648, %v1688_v44  ;;  %vm1694_vm3 = vweird.f32 %v1688_v44  ;;  %v1698_v38 = vand.u32 2147483647, %v1688_v44 }
0x178f   :  { %2233 = vrcp.f32 %v1621_v26  ;;  %v1633_v39 = vand.u32 2147483648, %v1621_v26  ;;  %vm1627_vm8 = vweird.f32 %v1621_v26  ;;  %v1631_v37 = vand.u32 2147483647, %v1621_v26 }
0x1790   :  { %v1701_v51 = vor.u32 1.1754944e-38, %v1700_v45  ;;  %vm1699_vm7 = vcmp.eq.f32.partialorder %v1698_v38, 8.507059e+37 }
0x1791   :  { %v1634_v53 = vor.u32 1.1754944e-38, %v1633_v39  ;;  %vm1632_vm9 = vcmp.eq.f32.partialorder %v1631_v37, 8.507059e+37 }
0x1794   :  { %v2232_v27 = vpop.eup %2231 }
0x1795   :  { %v1690_v28 = vmul.f32 %v2232_v27, %v1688_v44  ;;  %v2234_v29 = vpop.eup %2233  ;;  %vm1695_vm1 = vweird.f32 %v2232_v27 }
0x1796   :  { %v1623_v31 = vmul.f32 %v2234_v29, %v1621_v26  ;;  %vm1696_vm4 = vmor %vm1694_vm3, %vm1695_vm1  ;;  %vm1628_vm5 = vweird.f32 %v2234_v29 }
0x1797   :  { %v1691_v30 = vsub.f32 1.0, %v1690_v28  ;;  %vm1629_vm0 = vmor %vm1627_vm8, %vm1628_vm5  ;;  %vm560_vm8 = vcmask 91200  }
0x1798   :  { %v1624_v34 = vsub.f32 1.0, %v1623_v31 }
0x1799   :  { %v1692_v32 = vmul.f32 %v2232_v27, %v1691_v30 }
0x179a   :  { %v1625_v36 = vmul.f32 %v2234_v29, %v1624_v34 }
0x179b   :  { %v1693_v35 = vadd.f32 %v2232_v27, %v1692_v32 }
0x179c   :  { %v1626_v48 = vadd.f32 %v2234_v29, %v1625_v36 }
0x179d   :  { %v1697_v46 = vsel %vm1696_vm4, %v2232_v27, %v1693_v35 }
0x179e   :  { %v1702_v57 = vsel %vm1699_vm7, %v1701_v51, %v1697_v46  ;;  %v1630_v59 = vsel %vm1629_vm0, %v2234_v29, %v1626_v48  ;;  %vm406_vm7 = vcmask 58400   ;;  %vm719_vm0 = vcmask 124000  }
0x179f   :  { %v1635_v52 = vsel %vm1632_vm9, %v1634_v53, %v1630_v59  ;;  %v1708_v9 = vmul.f32 %v1706_v7, %v1702_v57  ;;  %vm873_vm9 = vcmask 156800  }
0x17a0   :  { %v1638_v18 = vmul.f32 %v1635_v52, %v2819_v12 }
0x17e1   :  { %v1711_v33 = vpop.permute.xlu1 %1710 }
0x17e2   :  { %v1713_v55 = vmul.f32 %v1711_v33, %v1702_v57 }
0x17e4   :  { %1715 = vrot.lane.b32.xlu0 %v1713_v55, %s2275_s1 }
0x17e5   :  { %v1641_v62 = vpop.permute.xlu2 %1640 }
0x17e6   :  { %v1643_v58 = vmul.f32 %v1641_v62, %v1635_v52 }
0x17e8   :  { %1645 = vrot.lane.b32.xlu1 %v1643_v58, %s2278_s22 }
0x1856   :  { %v1716_v56 = vpop.permute.xlu0 %1715 }
0x1857   :  { %v2839_v10 = vadd.f32 %v1716_v56, %v1708_v9 }
0x1859   :  { %2235 = vtanh.f32 %v2839_v10 }
0x185a   :  { %v1646_v14 = vpop.permute.xlu1 %1645 }
0x185b   :  { %v2843_v60 = vadd.f32 %v1646_v14, %v1638_v18  ;;  %v1864_v14 = vrot.slane %v2839_v10, 6 }
0x185d   :  { %2237 = vtanh.f32 %v2843_v60 }
0x185f   :  { %v2236_v11 = vpop.eup %2235 }
0x1860   :  { %1721 = vrot.lane.b32.xlu2 %v2236_v11, %s2275_s1 }
0x1863   :  { %v2238_v63 = vpop.eup %2237 }
0x1864   :  { %1651 = vrot.lane.b32.xlu0 %v2238_v63, %s2278_s22 }
0x18ba   :  { %v1722_v15 = vpop.permute.xlu2 %1721 }
0x18bb   :  { %v1724_v19 = vmul.f32 %v1722_v15, %v1702_v57 }
0x18bd   :  { %v1750_v54 = vrot.slane %v1724_v19, 4 }
0x18bf   :  { %1751 = vrot.lane.b32.xlu1 %v1750_v54, %s2276_s18 }
0x18d6   :  { %v1652_v17 = vpop.permute.xlu0 %1651 }
0x18d7   :  { %v2849_v5 = vmul.f32 %v1652_v17, %v1635_v52 }
0x18d9   :  { %1725 = vrot.lane.b32.xlu2 %v2849_v5, %s2279_s23 }
0x1931   :  { %v1752_v12 = vpop.permute.xlu1 %1751 }
0x1932   :  { %2047 = vmatmul.msk.f32.vlgmr.msrb.gmra.mxu2 %vm92_vm6, %v1752_v12  ;;  %2049 = vmatmul.msk.f32.vlgmr.msrb.gmra.mxu1 %vm92_vm6, %v1752_v12 }
0x1933   :  { %v1726_v22 = vpop.permute.xlu2 %1725 }
0x1934   :  { %2046 = vmatmul.msk.f32.vlgmr.msrb.gmra.mxu0 %vm154_vm2, %v1726_v22 }
0x19af   :  { %v1836_v23 = vpop.f32.mrf.mxu1 }
0x19b0   :  { %v1840_v43 = vrot.slane %v1836_v23, 2 }
0x19b1   :  { %v1746_v24 = vpop.f32.mrf.mxu0 }
0x19b2   :  { %v1842_v0 = vadd.f32 %v1840_v43, %v2772_v16 }
0x19b4   :  { %2239 = vtanh.f32 %v1842_v0  ;;  %v2050_v42 = vmul.f32 -1.442695, %v1842_v0 }
0x19b5   :  { %v1772_v1 = vpop.f32.mrf.mxu2 }
0x19b6   :  { %v1773_v8 = vadd.f32 %v1772_v1, %v1746_v24 }
0x19b8   :  { %v1775_v25 = vadd.f32 %v2734_v13, %v1773_v8 }
0x19ba   :  { %v2240_v41 = vpop.eup %2239  ;;  %2241 = vtanh.f32 %v1775_v25  ;;  %v2048_v2 = vmul.f32 -1.442695, %v1775_v25 }
0x19bb   :  { %1868 = vrot.lane.b32.xlu1 %v2240_v41, %s2275_s1  ;;  %2243 = vpow2.f32 %v2050_v42 }
0x19bc   :  { %2245 = vpow2.f32 %v2048_v2 }
0x19c0   :  { %v2242_v40 = vpop.eup %2241 }
0x19c1   :  { %1798 = vrot.lane.b32.xlu0 %v2242_v40, %s2277_s21  ;;  %v2244_v44 = vpop.eup %2243 }
0x19c2   :  { %v1846_v3 = vadd.f32 1.0, %v2244_v44  ;;  %v2246_v16 = vpop.eup %2245 }
0x19c3   :  { %v1779_v26 = vadd.f32 1.0, %v2246_v16 }
0x19c4   :  { %2247 = vrcp.f32 %v1846_v3  ;;  %v1858_v36 = vand.u32 2147483648, %v1846_v3  ;;  %vm1852_vm11 = vweird.f32 %v1846_v3  ;;  %v1856_v45 = vand.u32 2147483647, %v1846_v3 }
0x19c5   :  { %2249 = vrcp.f32 %v1779_v26  ;;  %v1791_v57 = vand.u32 2147483648, %v1779_v26  ;;  %vm1785_vm15 = vweird.f32 %v1779_v26  ;;  %v1789_v55 = vand.u32 2147483647, %v1779_v26 }
0x19c6   :  { %v1859_v48 = vor.u32 1.1754944e-38, %v1858_v36  ;;  %vm1857_vm13 = vcmp.eq.f32.partialorder %v1856_v45, 8.507059e+37 }
0x19c7   :  { %v1792_v53 = vor.u32 1.1754944e-38, %v1791_v57  ;;  %vm1790_vm3 = vcmp.eq.f32.partialorder %v1789_v55, 8.507059e+37 }
0x19ca   :  { %v2248_v27 = vpop.eup %2247 }
0x19cb   :  { %v1848_v28 = vmul.f32 %v2248_v27, %v1846_v3  ;;  %v2250_v29 = vpop.eup %2249  ;;  %vm1853_vm10 = vweird.f32 %v2248_v27 }
0x19cc   :  { %v1781_v31 = vmul.f32 %v2250_v29, %v1779_v26  ;;  %vm1854_vm12 = vmor %vm1852_vm11, %vm1853_vm10  ;;  %vm1786_vm14 = vweird.f32 %v2250_v29  ;;  %vm1031_vm10 = vcmask 189600   ;;  %vm1189_vm11 = vcmask 222400  }
0x19cd   :  { %v1849_v30 = vsub.f32 1.0, %v1848_v28  ;;  %vm1787_vm1 = vmor %vm1785_vm15, %vm1786_vm14  ;;  %vm1659_vm14 = vcmask 320800   ;;  %vm1817_vm15 = vcmask 353600  }
0x19ce   :  { %v1782_v34 = vsub.f32 1.0, %v1781_v31 }
0x19cf   :  { %v1850_v32 = vmul.f32 %v2248_v27, %v1849_v30 }
0x19d0   :  { %v1783_v38 = vmul.f32 %v2250_v29, %v1782_v34 }
0x19d1   :  { %v1851_v35 = vadd.f32 %v2248_v27, %v1850_v32 }
0x19d2   :  { %v1784_v51 = vadd.f32 %v2250_v29, %v1783_v38 }
0x19d3   :  { %v1855_v46 = vsel %vm1854_vm12, %v2248_v27, %v1851_v35  ;;  %vm1347_vm12 = vcmask 255200  }
0x19d4   :  { %v1860_v37 = vsel %vm1857_vm13, %v1859_v48, %v1855_v46  ;;  %v1788_v59 = vsel %vm1787_vm1, %v2250_v29, %v1784_v51  ;;  %vm1501_vm13 = vcmask 288000   ;;  %vm1975_vm1 = vcmask 386400  }
0x19d5   :  { %v1793_v52 = vsel %vm1790_vm3, %v1792_v53, %v1788_v59  ;;  %v1866_v11 = vmul.f32 %v1864_v14, %v1860_v37 }
0x19d6   :  { %v1796_v7 = vmul.f32 %v1793_v52, %v2843_v60 }
0x1a2d   :  { %v1869_v39 = vpop.permute.xlu1 %1868 }
0x1a2e   :  { %v1871_v33 = vmul.f32 %v1869_v39, %v1860_v37 }
0x1a30   :  { %1873 = vrot.lane.b32.xlu0 %v1871_v33, %s2275_s1 }
0x1a33   :  { %v1799_v62 = vpop.permute.xlu0 %1798 }
0x1a34   :  { %v1801_v58 = vmul.f32 %v1799_v62, %v1793_v52 }
0x1a36   :  { %1803 = vrot.lane.b32.xlu2 %v1801_v58, %s2278_s22 }
0x1a90   :  { %v1804_v9 = vpop.permute.xlu2 %1803 }
0x1a91   :  { %v2863_v56 = vadd.f32 %v1804_v9, %v1796_v7 }
0x1a93   :  { %2251 = vtanh.f32 %v2863_v56 }
0x1a99   :  { %v2252_v18 = vpop.eup %2251 }
0x1a9a   :  { %1809 = vrot.lane.b32.xlu1 %v2252_v18, %s2278_s22 }
0x1aa2   :  { %v1874_v63 = vpop.permute.xlu0 %1873 }
0x1aa3   :  { %v1876_v15 = vadd.f32 %v1874_v63, %v1866_v11 }
0x1aa5   :  { %2253 = vtanh.f32 %v1876_v15 }
0x1aab   :  { %v2254_v19 = vpop.eup %2253 }
0x1aac   :  { %1879 = vrot.lane.b32.xlu2 %v2254_v19, %s2275_s1 }
0x1b06   :  { %v1880_v54 = vpop.permute.xlu2 %1879 }
0x1b07   :  { %v1882_v17 = vmul.f32 %v1880_v54, %v1860_v37 }
0x1b09   :  { %v1908_v60 = vrot.slane %v1882_v17, 6 }
0x1b0b   :  { %1909 = vrot.lane.b32.xlu1 %v1908_v60, %s2276_s18  ;;  %s2281_s18 = smov 12  }
0x1b0c   :  { %v1810_v12 = vpop.permute.xlu1 %1809 }
0x1b0d   :  { %v2870_v22 = vmul.f32 %v1810_v12, %v1793_v52 }
0x1b0f   :  { %1883 = vrot.lane.b32.xlu0 %v2870_v22, %s2279_s23  ;;  %s2282_s23 = smov 24  }
0x1b7d   :  { %v1910_v23 = vpop.permute.xlu1 %1909 }
0x1b7e   :  { %2053 = vmatmul.msk.f32.vlgmr.msra.gmra.mxu0 %vm92_vm6, %v1910_v23 }
0x1b81   :  { %v1884_v10 = vpop.permute.xlu0 %1883 }
0x1b82   :  { %2052 = vmatmul.msk.f32.vlgmr.msrb.gmra.mxu3 %vm154_vm2, %v1884_v10 }
0x1bfb   :  { %v1930_v43 = vpop.f32.mrf.mxu0 }
0x1c05   :  { %v1904_v0 = vpop.f32.mrf.mxu3 }
0x1c06   :  { %v1931_v24 = vadd.f32 %v1930_v43, %v1904_v0 }
0x1c08   :  { %v1933_v1 = vadd.f32 %v2734_v13, %v1931_v24 }
0x1c0a   :  { %2255 = vtanh.f32 %v1933_v1  ;;  %v2054_v25 = vmul.f32 -1.442695, %v1933_v1 }
0x1c0c   :  { %2257 = vpow2.f32 %v2054_v25 }
0x1c10   :  { %v2256_v8 = vpop.eup %2255 }
0x1c11   :  { %1956 = vrot.lane.b32.xlu2 %v2256_v8, %s2277_s21 }
0x1c12   :  { %v2258_v41 = vpop.eup %2257 }
0x1c13   :  { %v1937_v40 = vadd.f32 1.0, %v2258_v41 }
0x1c15   :  { %2259 = vrcp.f32 %v1937_v40  ;;  %v1949_v16 = vand.u32 2147483648, %v1937_v40  ;;  %vm1943_vm2 = vweird.f32 %v1937_v40 }
0x1c19   :  { %403 = vrot.lane.b32.xlu2 %v2517_v50, %s2280_s3  ;;  %v1947_v50 = vand.u32 2147483647, %v1937_v40 }
0x1c1b   :  { %v2260_v42 = vpop.eup %2259  ;;  %vm1948_vm5 = vcmp.eq.f32.partialorder %v1947_v50, 8.507059e+37 }
0x1c1c   :  { %v1939_v13 = vmul.f32 %v2260_v42, %v1937_v40  ;;  %vm1944_vm6 = vweird.f32 %v2260_v42 }
0x1c1d   :  { %vm1945_vm4 = vmor %vm1943_vm2, %vm1944_vm6 }
0x1c1e   :  { %v1940_v2 = vsub.f32 1.0, %v1939_v13 }
0x1c20   :  { %v1941_v44 = vmul.f32 %v2260_v42, %v1940_v2 }
0x1c21   :  { %1028 = vrot.lane.b32.xlu2 %v2686_v6, %s2281_s18  ;;  %v1950_v6 = vor.u32 1.1754944e-38, %v1949_v16 }
0x1c22   :  { %v1942_v3 = vadd.f32 %v2260_v42, %v1941_v44 }
0x1c24   :  { %v1946_v26 = vsel %vm1945_vm4, %v2260_v42, %v1942_v3 }
0x1c29   :  { %1498 = vrot.lane.b32.xlu2 %v2825_v21, %s2282_s23  ;;  %v1951_v21 = vsel %vm1948_vm5, %v1950_v6, %v1946_v26 }
0x1c2a   :  { %v1954_v30 = vmul.f32 %v1951_v21, %v2863_v56 }
0x1c6b   :  { %v1957_v27 = vpop.permute.xlu2 %1956 }
0x1c6c   :  { %v1959_v28 = vmul.f32 %v1957_v27, %v1951_v21 }
0x1c6e   :  { %1961 = vrot.lane.b32.xlu0 %v1959_v28, %s2278_s22 }
0x1c73   :  { %v404_v29 = vpop.permute.xlu2 %403 }
0x1c74   :  { %407 = vst.msk [vmem:[%s2933_s7] sm:$0x3] %vm406_vm7, %v404_v29 }
0x1c75   :  { %561 = vst.msk [vmem:[%s2933_s7] sm:$0x3] %vm560_vm8, %v2549_v47 }
0x1c76   :  { %716 = vrot.lane.b32.xlu0 %v2597_v61, %s2278_s22 }
0x1c7e   :  { %1186 = vrot.lane.b32.xlu0 %v2751_v49, %s2283_s30  ;;  %v1029_v49 = vpop.permute.xlu2 %1028 }
0x1c86   :  { %1656 = vrot.lane.b32.xlu0 %v2849_v5, %s2284_s8 }
0x1ce0   :  { %v1962_v31 = vpop.permute.xlu0 %1961 }
0x1ce1   :  { %v1964_v32 = vadd.f32 %v1962_v31, %v1954_v30 }
0x1ce3   :  { %2261 = vtanh.f32 %v1964_v32 }
0x1ce8   :  { %v717_v34 = vpop.permute.xlu0 %716 }
0x1ce9   :  { %v2262_v35 = vpop.eup %2261  ;;  %720 = vst.msk [vmem:[%s2933_s7] sm:$0x3] %vm719_vm0, %v717_v34 }
0x1cea   :  { %1967 = vrot.lane.b32.xlu1 %v2262_v35, %s2278_s22 }
0x1cf0   :  { %v1187_v5 = vpop.permute.xlu0 %1186 }
0x1cf2   :  { %870 = vrot.lane.b32.xlu1 %v2633_v4, %s2285_s11 }
0x1cf8   :  { %v1657_v45 = vpop.permute.xlu0 %1656 }
0x1cfa   :  { %1344 = vrot.lane.b32.xlu1 %v2790_v20, %s2286_s12  ;;  %v1499_v20 = vpop.permute.xlu2 %1498 }
0x1d02   :  { %1814 = vrot.lane.b32.xlu1 %v2870_v22, %s2275_s1 }
0x1d5c   :  { %v1968_v47 = vpop.permute.xlu1 %1967 }
0x1d5d   :  { %v1970_v61 = vmul.f32 %v1968_v47, %v1951_v21 }
0x1d5f   :  { %1972 = vrot.lane.b32.xlu2 %v1970_v61, %s2287_s13 }
0x1d64   :  { %v871_v36 = vpop.permute.xlu1 %870 }
0x1d65   :  { %874 = vst.msk [vmem:[%s2933_s7] sm:$0x3] %vm873_vm9, %v871_v36 }
0x1d66   :  { %1032 = vst.msk [vmem:[%s2933_s7] sm:$0x3] %vm1031_vm10, %v1029_v49 }
0x1d67   :  { %1190 = vst.msk [vmem:[%s2933_s7] sm:$0x3] %vm1189_vm11, %v1187_v5 }
0x1d6c   :  { %v1345_v4 = vpop.permute.xlu1 %1344 }
0x1d6d   :  { %1348 = vst.msk [vmem:[%s2933_s7] sm:$0x3] %vm1347_vm12, %v1345_v4 }
0x1d6e   :  { %1502 = vst.msk [vmem:[%s2933_s7] sm:$0x3] %vm1501_vm13, %v1499_v20 }
0x1d6f   :  { %1660 = vst.msk [vmem:[%s2933_s7] sm:$0x3] %vm1659_vm14, %v1657_v45 }
0x1d74   :  { %v1815_v38 = vpop.permute.xlu1 %1814 }
0x1d75   :  { %1818 = vst.msk [vmem:[%s2933_s7] sm:$0x3] %vm1817_vm15, %v1815_v38 }
0x1db9   :  { %v1973_v46 = vpop.permute.xlu2 %1972 }
0x1dba   :  { %1976 = vst.msk [vmem:[%s2933_s7] sm:$0x3] %vm1975_vm1, %v1973_v46 }

</bundles_post_ra>
